<compile_context>
chip_gen: v6e
topology: v6e:2x2x1
jax: 0.10.0
libtpu: 0.0.40
codegen_flags: <defaults>
</compile_context>

<pallas_src>
import functools

import jax
import jax.numpy as jnp
from jax.experimental import pallas as pl
from jax.experimental.pallas import tpu as pltpu


# --------------------------------------------------------------------------------------
# Kernel
# --------------------------------------------------------------------------------------
def coattn_kernel(q_ref, img_ref, x_ref, wqq_ref, wv_ref, vcol_ref, whq_ref, out_ref,
                  *, k_chunk, operand_dtype):
    f32 = jnp.float32
    q = q_ref[...]        # (BB, T, d) embedded questions                (stream dtype)
    img = img_ref[...]    # (BB, d, N) image features                    (stream dtype)
    x = x_ref[...]        # (BB, T, d) = W_b(questions), hoisted         (stream dtype)
    Wq_q = wqq_ref[...]   # (BB, T, k) = W_q(questions), hoisted         (stream dtype)
    vcol = vcol_ref[...].astype(f32)   # (k, 2): [:,0] = W_v bias, [:,1] = w_hv weight
    whq = whq_ref[...].astype(f32)     # (1, k): w_hq weight

    BB, T, d = q.shape
    N = img.shape[-1]
    k = Wq_q.shape[-1]

    # Affinity matrix C = tanh(W_b(q) @ images); f32 accumulation on the MXU.
    C = jnp.tanh(jnp.einsum("btd,bdn->btn", x, img,
                            preferred_element_type=f32))                  # (BB, T, N) f32
    Cm = C.astype(operand_dtype)

    # Chunk over k: H_v / H_q / W_v(img^T) chunks live only inside one iteration (the
    # s_v/s_q accumulation serializes the chunks).  Static Python loop: 1-2 iterations at
    # realistic k.  TODO(synk): switch to lax.fori_loop + aligned pl.ds slices if k grows
    # large enough that unrolling stops bounding live ranges.
    s_v = jnp.zeros((BB, N), f32)
    s_q = jnp.zeros((BB, T), f32)
    step = min(k, k_chunk)
    for lo in range(0, k, step):
        hi = min(k, lo + step)
        cw = hi - lo
        wv_c = wv_ref[lo:hi, :]            # (cw, d) W_v weight chunk (resident, DMA'd once)
        wvb_c = vcol[lo:hi, 0:1]           # (cw, 1) W_v bias chunk   (sublane-aligned)
        whv_c = vcol[lo:hi, 1:2]           # (cw, 1) w_hv chunk       (sublane-aligned)
        whq_c = whq[:, lo:hi]              # (1, cw) w_hq chunk       (lane-aligned)
        wqq_c = Wq_q[:, :, lo:hi]          # (BB, T, cw)

        # W_v(images^T) chunk computed in-kernel, in transposed (BB, cw, N) layout so every
        # einsum below stays in a canonical batched form.  Broadcasting the (cw, d) weight
        # over the batch costs only VMEM/VPU copies; the (B, N, k) tensor never hits HBM.
        wv_b = jnp.broadcast_to(wv_c[None], (BB, cw, d))
        WvT_c = jnp.einsum("bcd,bdn->bcn", wv_b, img,
                           preferred_element_type=f32) + wvb_c[None]      # (BB, cw, N) f32

        # H_v^T chunk -> s_v contribution (broadcast-multiply + reduce over the chunk axis).
        HvT_c = jnp.tanh(WvT_c + jnp.einsum("btc,btn->bcn", wqq_c, Cm,
                                            preferred_element_type=f32))  # (BB, cw, N)
        s_v = s_v + jnp.sum(HvT_c * whv_c[None], axis=1)                  # (BB, N)

        # H_q chunk -> s_q contribution (lane reduce over the chunk axis).
        Hq_c = jnp.tanh(wqq_c.astype(f32)
                        + jnp.einsum("btn,bcn->btc", Cm, WvT_c.astype(operand_dtype),
                                     preferred_element_type=f32))         # (BB, T, cw)
        s_q = s_q + jnp.sum(Hq_c * whq_c[None], axis=-1)                  # (BB, T)

    # Softmax over regions / tokens.  The scalar w_hv / w_hq biases were dropped upstream:
    # they shift every logit equally and are softmax-invariant (exact).  The EUP divide via
    # pl.reciprocal(approx=True) is ~1e-3-relative accurate.
    def _softmax(s):
        m = jnp.max(s, axis=-1, keepdims=True)
        e = jnp.exp(s - m)
        return e * pl.reciprocal(jnp.sum(e, axis=-1, keepdims=True), approx=True)

    a_v = _softmax(s_v)                                                   # (BB, N)
    a_q = _softmax(s_q)                                                   # (BB, T)

    # Attended features: broadcast-multiply + reduce (no transposes of img / q).
    v_hat = jnp.sum(a_v[:, None, :] * img.astype(f32), axis=-1)           # (BB, d)
    q_hat = jnp.sum(a_q[:, :, None] * q.astype(f32), axis=1)              # (BB, d)

    # Single lane-packed output slab: [q_hat | v_hat] -> one full-block store per step.
    out_ref[...] = jnp.concatenate([q_hat, v_hat], axis=-1).astype(out_ref.dtype)


# --------------------------------------------------------------------------------------
# Wrapper
# --------------------------------------------------------------------------------------
def _round_up(x, m):
    return ((x + m - 1) // m) * m


def _vmem_budget_bytes():
    """Per-generation scoped-VMEM target: ~48 MiB on v7x (64 MiB physical per TC),
    ~96 MiB on v5e/v6e (128 MiB physical).  Conservative fallback if the query fails."""
    try:
        phys = int(pltpu.get_tpu_info().vmem_capacity_bytes)
    except Exception:
        phys = 64 * 1024 * 1024
    return max(32 * 1024 * 1024, min(96 * 1024 * 1024, (phys * 3) // 4))


def _pick_block_b(B, T, d, N, k, kc, itemsize, vmem_limit_bytes):
    """Largest batch block whose double-buffered streamed inputs + in-kernel working set fit
    ~60% of the scoped-VMEM budget, while keeping >= 2 grid steps when B allows it (so
    dimension_semantics=('parallel',) can shard the grid across v7x's two TensorCores)."""
    budget = (3 * vmem_limit_bytes) // 5
    per_b_stream = 2 * (2 * T * d + d * N + T * k) * itemsize          # double-buffered DMAs
    per_b_work = (6 * T * N                                            # C (+ bf16 copy)
                  + kc * d * itemsize                                  # broadcast W_v chunk
                  + 10 * kc * N                                        # WvT / HvT chunk
                  + 4 * T * kc                                         # Hq chunk
                  + 16 * d)                                            # outputs / misc
    cap = max(8, _round_up(B, 8))
    pick = 8
    for bb in (8, 16, 32, 64):
        if bb > cap:
            break
        if bb > 8 and B > 8 and (B + bb - 1) // bb < 2:
            break
        if bb * (per_b_stream + per_b_work) > budget:
            break
        pick = bb
    return pick


def parallel_co_attention(q_emb, images, params, *, block_b=None, k_chunk=256,
                          stream_dtype=jnp.bfloat16):
    """q_emb: (B, T, d) f32 embedded questions. images: (B, d, N) f32.

    Returns (q_hat, v_hat), each (B, d) f32."""
    B, T, d = q_emb.shape
    _, _, N = images.shape
    k = params["W_q_w"].shape[0]
    f32 = jnp.float32

    # Hoisted batch-independent projections (f32), then cast the streamed operands to
    # stream_dtype (bf16 default) to halve HBM traffic; accumulation stays f32 in-kernel.
    x = q_emb @ params["W_b_w"].T + params["W_b_b"]            # (B, T, d)
    Wq_q = q_emb @ params["W_q_w"].T + params["W_q_b"]         # (B, T, k)
    # W_v(images^T) is computed inside the kernel from the images block + the (k, d) W_v
    # weight (single resident copy), so the (B, N, k) tensor is never streamed from HBM.

    qs = q_emb.astype(stream_dtype)
    imgs = images.astype(stream_dtype)
    xs = x.astype(stream_dtype)
    wqqs = Wq_q.astype(stream_dtype)
    wv = params["W_v_w"].astype(stream_dtype)                  # (k, d)
    # Head params packed into two tiny constant blocks, laid out along the axis they
    # broadcast over in-kernel.  The scalar w_hv/w_hq biases are softmax-invariant: dropped.
    vcol = jnp.stack([params["W_v_b"].astype(f32),
                      params["w_hv_w"].reshape(k).astype(f32)], axis=1)   # (k, 2)
    whq = params["w_hq_w"].astype(f32).reshape(1, k)                      # (1, k)

    kc = min(k, k_chunk)
    itemsize = jnp.dtype(stream_dtype).itemsize
    vmem_limit = _vmem_budget_bytes()
    BB = block_b if block_b is not None else _pick_block_b(B, T, d, N, k, kc, itemsize,
                                                           vmem_limit)
    BB = max(8, _round_up(BB, 8))     # keep the packed (BB, 2*d) output block (8,128)-legal

    Bp = _round_up(B, BB)
    if Bp != B:                       # padded rows are finite (no NaN) and discarded below
        pad3 = lambda a: jnp.pad(a, ((0, Bp - B), (0, 0), (0, 0)))
        qs, imgs, xs, wqqs = map(pad3, (qs, imgs, xs, wqqs))

    def batched(shape):
        return pl.BlockSpec((BB,) + shape, lambda b: (b, 0, 0))

    def const2d(shape):
        return pl.BlockSpec(shape, lambda b: (0, 0))

    kern = functools.partial(coattn_kernel, k_chunk=kc, operand_dtype=stream_dtype)
    out = pl.pallas_call(
        kern,
        out_shape=jax.ShapeDtypeStruct((Bp, 2 * d), f32),
        grid_spec=pltpu.PrefetchScalarGridSpec(
            num_scalar_prefetch=0,
            grid=(Bp // BB,),
            in_specs=[
                batched((T, d)),     # questions (embedded)
                batched((d, N)),     # images
                batched((T, d)),     # x    = W_b(q)
                batched((T, k)),     # Wq_q = W_q(q)
                const2d((k, d)),     # W_v weight   (constant index -> fetched once)
                const2d((k, 2)),     # [W_v bias | w_hv]
                const2d((1, k)),     # w_hq
            ],
            out_specs=pl.BlockSpec((BB, 2 * d), lambda b: (b, 0)),
        ),
        compiler_params=pltpu.CompilerParams(
            dimension_semantics=("parallel",),      # shards batch blocks across TCs on v7x
            vmem_limit_bytes=int(vmem_limit),
        ),
    )(qs, imgs, xs, wqqs, wv, vcol, whq)

    return out[:B, :d], out[:B, d:]


# --------------------------------------------------------------------------------------
# Plain-JAX reference (mirror of the PyTorch forward; dropout = identity)
# --------------------------------------------------------------------------------------
def reference(q_emb, images, params):
    q = q_emb
    x = q @ params["W_b_w"].T + params["W_b_b"]
    C = jnp.tanh(jnp.einsum("btd,bdn->btn", x, images))
    Wq_q = q @ params["W_q_w"].T + params["W_q_b"]                                   # (B,T,k)
    Wv_v = jnp.einsum("bdn,kd->bnk", images, params["W_v_w"]) + params["W_v_b"]      # (B,N,k)
    H_v = jnp.tanh(Wv_v + jnp.einsum("btn,btk->bnk", C, Wq_q))                       # (B,N,k)
    a_v = jax.nn.softmax(H_v @ params["w_hv_w"].T + params["w_hv_b"], axis=1)        # (B,N,1)
    v_hat = jnp.sum(jnp.swapaxes(a_v, 1, 2) * images, axis=2)                        # (B,d)
    H_q = jnp.tanh(Wq_q + jnp.einsum("btn,bnk->btk", C, Wv_v))                       # (B,T,k)
    a_q = jax.nn.softmax(H_q @ params["w_hq_w"].T + params["w_hq_b"], axis=1)        # (B,T,1)
    q_hat = jnp.sum(a_q * q, axis=1)                                                 # (B,d)
    return q_hat, v_hat


if __name__ == "__main__":
    # Small shapes consistent with the module: d == embedding_dim, k hidden, T tokens,
    # N image regions (image features arrive as (B, d, N)).  B=6 exercises batch padding.
    B, T, d, k, N, vocab = 6, 8, 32, 32, 16, 50

    key = jax.random.PRNGKey(0)
    keys = jax.random.split(key, 16)

    params = {
        "emb_w":  jax.random.normal(keys[0], (vocab, d), jnp.float32) * 0.1,
        "W_b_w":  jax.random.normal(keys[1], (d, d), jnp.float32) * 0.1,
        "W_b_b":  jax.random.normal(keys[2], (d,), jnp.float32) * 0.1,
        "W_q_w":  jax.random.normal(keys[3], (k, d), jnp.float32) * 0.1,
        "W_q_b":  jax.random.normal(keys[4], (k,), jnp.float32) * 0.1,
        "W_v_w":  jax.random.normal(keys[5], (k, d), jnp.float32) * 0.1,
        "W_v_b":  jax.random.normal(keys[6], (k,), jnp.float32) * 0.1,
        "w_hv_w": jax.random.normal(keys[7], (1, k), jnp.float32) * 0.1,
        "w_hv_b": jax.random.normal(keys[8], (1,), jnp.float32) * 0.1,
        "w_hq_w": jax.random.normal(keys[9], (1, k), jnp.float32) * 0.1,
        "w_hq_b": jax.random.normal(keys[10], (1,), jnp.float32) * 0.1,
    }

    questions = jax.random.randint(keys[11], (B, T), 0, vocab, dtype=jnp.int32)
    images = jax.random.normal(keys[12], (B, d, N), jnp.float32)

    # Embedding lookup (gather) done as glue in plain JAX; dropout is identity at inference.
    q_emb = params["emb_w"][questions]  # (B, T, d)

    q_ref_, v_ref_ = reference(q_emb, images, params)

    # 1) float32 streaming path (tight tolerance; only the EUP-approx softmax divide differs).
    fn32 = jax.jit(functools.partial(parallel_co_attention, stream_dtype=jnp.float32))
    q_hat, v_hat = fn32(q_emb, images, params)
    jax.block_until_ready((q_hat, v_hat))
    assert q_hat.shape == (B, d) and v_hat.shape == (B, d)
    assert jnp.allclose(q_hat, q_ref_, atol=2e-3, rtol=2e-3)
    assert jnp.allclose(v_hat, v_ref_, atol=2e-3, rtol=2e-3)

    # 2) default (production) path: bf16-streamed operands, f32 accumulation.
    fn16 = jax.jit(parallel_co_attention)
    q_hat16, v_hat16 = fn16(q_emb, images, params)
    jax.block_until_ready((q_hat16, v_hat16))
    assert q_hat16.shape == (B, d) and v_hat16.shape == (B, d)
    assert jnp.allclose(q_hat16, q_ref_, atol=2e-2, rtol=2e-2)
    assert jnp.allclose(v_hat16, v_ref_, atol=2e-2, rtol=2e-2)

    print("KERNEL_OK")
</pallas_src>

<mosaic_0001>
module attributes {stable_mosaic.version = 11 : i64} {
  func.func @coattn_kernel(%arg0: i32, %arg1: memref<8x8x32xf32, #tpu.memory_space<vmem>>, %arg2: memref<8x32x16xf32, #tpu.memory_space<vmem>>, %arg3: memref<8x8x32xf32, #tpu.memory_space<vmem>>, %arg4: memref<8x8x32xf32, #tpu.memory_space<vmem>>, %arg5: memref<32x32xf32, #tpu.memory_space<vmem>>, %arg6: memref<32x2xf32, #tpu.memory_space<vmem>>, %arg7: memref<1x32xf32, #tpu.memory_space<vmem>>, %arg8: memref<8x64xf32, #tpu.memory_space<vmem>>) attributes {dimension_semantics = [#tpu.dimension_semantics<parallel>], iteration_bounds = array<i64: 1>, scalar_prefetch = 0 : i64, scratch_operands = 0 : i64, tpu.core_type = #tpu.core_type<tc>, window_params = [{transform_indices = @transform_0, window_bounds = array<i64: 8, 8, 32>}, {transform_indices = @transform_1, window_bounds = array<i64: 8, 32, 16>}, {transform_indices = @transform_2, window_bounds = array<i64: 8, 8, 32>}, {transform_indices = @transform_3, window_bounds = array<i64: 8, 8, 32>}, {pipeline_mode = #tpu.pipeline_mode<synchronous>, transform_indices = @transform_4, window_bounds = array<i64: 32, 32>}, {pipeline_mode = #tpu.pipeline_mode<synchronous>, transform_indices = @transform_5, window_bounds = array<i64: 32, 2>}, {pipeline_mode = #tpu.pipeline_mode<synchronous>, transform_indices = @transform_6, window_bounds = array<i64: 1, 32>}, {transform_indices = @transform_7, window_bounds = array<i64: 8, 64>}]} {
    %c0 = arith.constant 0 : index
    %c0_0 = arith.constant 0 : index
    %c0_1 = arith.constant 0 : index
    %0 = vector.load %arg1[%c0, %c0_0, %c0_1] : memref<8x8x32xf32, #tpu.memory_space<vmem>>, vector<8x8x32xf32>
    %c0_2 = arith.constant 0 : index
    %c0_3 = arith.constant 0 : index
    %c0_4 = arith.constant 0 : index
    %1 = vector.load %arg2[%c0_2, %c0_3, %c0_4] : memref<8x32x16xf32, #tpu.memory_space<vmem>>, vector<8x32x16xf32>
    %c0_5 = arith.constant 0 : index
    %c0_6 = arith.constant 0 : index
    %c0_7 = arith.constant 0 : index
    %2 = vector.load %arg3[%c0_5, %c0_6, %c0_7] : memref<8x8x32xf32, #tpu.memory_space<vmem>>, vector<8x8x32xf32>
    %c0_8 = arith.constant 0 : index
    %c0_9 = arith.constant 0 : index
    %c0_10 = arith.constant 0 : index
    %3 = vector.load %arg4[%c0_8, %c0_9, %c0_10] : memref<8x8x32xf32, #tpu.memory_space<vmem>>, vector<8x8x32xf32>
    %c0_11 = arith.constant 0 : index
    %c0_12 = arith.constant 0 : index
    %4 = vector.load %arg6[%c0_11, %c0_12] : memref<32x2xf32, #tpu.memory_space<vmem>>, vector<32x2xf32>
    %c0_13 = arith.constant 0 : index
    %c0_14 = arith.constant 0 : index
    %5 = vector.load %arg7[%c0_13, %c0_14] : memref<1x32xf32, #tpu.memory_space<vmem>>, vector<1x32xf32>
    "tpu.trace_start"() <{level = 10 : i32, message = "btd,bdn->btn"}> : () -> ()
    %cst = arith.constant dense<0.000000e+00> : vector<8x8x16xf32>
    %6 = tpu.matmul %2, %1, %cst {dimension_numbers = #tpu.dot_dimension_numbers<[2], [1], [1], [2], [0, 0, 0, 1, 1, 2], [0], [0]>} : vector<8x8x32xf32>, vector<8x32x16xf32>, vector<8x8x16xf32> -> vector<8x8x16xf32>
    "tpu.trace_stop"() : () -> ()
    %7 = math.tanh %6 : vector<8x8x16xf32>
    %cst_15 = arith.constant 0.000000e+00 : f32
    %8 = vector.broadcast %cst_15 : f32 to vector<8x16xf32>
    %cst_16 = arith.constant 0.000000e+00 : f32
    %9 = vector.broadcast %cst_16 : f32 to vector<8x8xf32>
    %c0_17 = arith.constant 0 : index
    %c0_18 = arith.constant 0 : index
    %10 = vector.load %arg5[%c0_17, %c0_18] : memref<32x32xf32, #tpu.memory_space<vmem>>, vector<32x32xf32>
    %11 = vector.extract_strided_slice %4 {offsets = [0, 0], sizes = [32, 1], strides = [1, 1]} : vector<32x2xf32> to vector<32x1xf32>
    %12 = vector.extract_strided_slice %4 {offsets = [0, 1], sizes = [32, 1], strides = [1, 1]} : vector<32x2xf32> to vector<32x1xf32>
    %13 = vector.shape_cast %10 : vector<32x32xf32> to vector<1x32x32xf32>
    %14 = vector.shape_cast %13 : vector<1x32x32xf32> to vector<1x32x32xf32>
    %15 = vector.broadcast %14 : vector<1x32x32xf32> to vector<8x32x32xf32>
    "tpu.trace_start"() <{level = 10 : i32, message = "bcd,bdn->bcn"}> : () -> ()
    %cst_19 = arith.constant dense<0.000000e+00> : vector<8x32x16xf32>
    %16 = tpu.matmul %15, %1, %cst_19 {dimension_numbers = #tpu.dot_dimension_numbers<[2], [1], [1], [2], [0, 0, 0, 1, 1, 2], [0], [0]>} : vector<8x32x32xf32>, vector<8x32x16xf32>, vector<8x32x16xf32> -> vector<8x32x16xf32>
    "tpu.trace_stop"() : () -> ()
    %17 = vector.shape_cast %11 : vector<32x1xf32> to vector<1x32x1xf32>
    %18 = vector.broadcast %17 : vector<1x32x1xf32> to vector<8x32x16xf32>
    %19 = arith.addf %16, %18 : vector<8x32x16xf32>
    "tpu.trace_start"() <{level = 10 : i32, message = "btc,btn->bcn"}> : () -> ()
    %cst_20 = arith.constant dense<0.000000e+00> : vector<8x32x16xf32>
    %20 = tpu.matmul %3, %7, %cst_20 {dimension_numbers = #tpu.dot_dimension_numbers<[1], [1], [2], [2], [0, 0, 0, 2, 1, 2], [0], [0]>} : vector<8x8x32xf32>, vector<8x8x16xf32>, vector<8x32x16xf32> -> vector<8x32x16xf32>
    "tpu.trace_stop"() : () -> ()
    %21 = arith.addf %19, %20 : vector<8x32x16xf32>
    %22 = math.tanh %21 : vector<8x32x16xf32>
    %23 = vector.shape_cast %12 : vector<32x1xf32> to vector<1x32x1xf32>
    %24 = vector.broadcast %23 : vector<1x32x1xf32> to vector<8x32x16xf32>
    %25 = arith.mulf %22, %24 : vector<8x32x16xf32>
    %cst_21 = arith.constant dense<0.000000e+00> : vector<8x16xf32>
    %26 = vector.multi_reduction <add>, %25, %cst_21 [1] : vector<8x32x16xf32> to vector<8x16xf32>
    %27 = arith.addf %8, %26 : vector<8x16xf32>
    "tpu.trace_start"() <{level = 10 : i32, message = "btn,bcn->btc"}> : () -> ()
    %cst_22 = arith.constant dense<0.000000e+00> : vector<8x8x32xf32>
    %28 = tpu.matmul %7, %19, %cst_22 {dimension_numbers = #tpu.dot_dimension_numbers<[2], [2], [1], [1], [0, 0, 0, 1, 1, 1], [0], [0]>} : vector<8x8x16xf32>, vector<8x32x16xf32>, vector<8x8x32xf32> -> vector<8x8x32xf32>
    "tpu.trace_stop"() : () -> ()
    %29 = arith.addf %3, %28 : vector<8x8x32xf32>
    %30 = math.tanh %29 : vector<8x8x32xf32>
    %31 = vector.shape_cast %5 : vector<1x32xf32> to vector<1x1x32xf32>
    %32 = vector.broadcast %31 : vector<1x1x32xf32> to vector<8x8x32xf32>
    %33 = arith.mulf %30, %32 : vector<8x8x32xf32>
    %cst_23 = arith.constant dense<0.000000e+00> : vector<8x8xf32>
    %34 = vector.multi_reduction <add>, %33, %cst_23 [2] : vector<8x8x32xf32> to vector<8x8xf32>
    %35 = arith.addf %9, %34 : vector<8x8xf32>
    %cst_24 = arith.constant dense<0xFF800000> : vector<8xf32>
    %36 = vector.multi_reduction <maximumf>, %27, %cst_24 [1] : vector<8x16xf32> to vector<8xf32>
    %37 = vector.shape_cast %36 : vector<8xf32> to vector<8x1xf32>
    %38 = vector.broadcast %37 : vector<8x1xf32> to vector<8x16xf32>
    %39 = arith.subf %27, %38 : vector<8x16xf32>
    %40 = math.exp %39 : vector<8x16xf32>
    %cst_25 = arith.constant dense<0.000000e+00> : vector<8xf32>
    %41 = vector.multi_reduction <add>, %40, %cst_25 [1] : vector<8x16xf32> to vector<8xf32>
    %42 = vector.shape_cast %41 : vector<8xf32> to vector<8x1xf32>
    %43 = tpu.reciprocal %42 {approx = true} : vector<8x1xf32> -> vector<8x1xf32>
    %44 = vector.broadcast %43 : vector<8x1xf32> to vector<8x16xf32>
    %45 = arith.mulf %40, %44 : vector<8x16xf32>
    %cst_26 = arith.constant dense<0xFF800000> : vector<8xf32>
    %46 = vector.multi_reduction <maximumf>, %35, %cst_26 [1] : vector<8x8xf32> to vector<8xf32>
    %47 = vector.shape_cast %46 : vector<8xf32> to vector<8x1xf32>
    %48 = vector.broadcast %47 : vector<8x1xf32> to vector<8x8xf32>
    %49 = arith.subf %35, %48 : vector<8x8xf32>
    %50 = math.exp %49 : vector<8x8xf32>
    %cst_27 = arith.constant dense<0.000000e+00> : vector<8xf32>
    %51 = vector.multi_reduction <add>, %50, %cst_27 [1] : vector<8x8xf32> to vector<8xf32>
    %52 = vector.shape_cast %51 : vector<8xf32> to vector<8x1xf32>
    %53 = tpu.reciprocal %52 {approx = true} : vector<8x1xf32> -> vector<8x1xf32>
    %54 = vector.broadcast %53 : vector<8x1xf32> to vector<8x8xf32>
    %55 = arith.mulf %50, %54 : vector<8x8xf32>
    %56 = vector.shape_cast %45 : vector<8x16xf32> to vector<8x1x16xf32>
    %57 = vector.broadcast %56 : vector<8x1x16xf32> to vector<8x32x16xf32>
    %58 = arith.mulf %57, %1 : vector<8x32x16xf32>
    %cst_28 = arith.constant dense<0.000000e+00> : vector<8x32xf32>
    %59 = vector.multi_reduction <add>, %58, %cst_28 [2] : vector<8x32x16xf32> to vector<8x32xf32>
    %60 = vector.shape_cast %55 : vector<8x8xf32> to vector<8x8x1xf32>
    %61 = vector.broadcast %60 : vector<8x8x1xf32> to vector<8x8x32xf32>
    %62 = arith.mulf %61, %0 : vector<8x8x32xf32>
    %cst_29 = arith.constant dense<0.000000e+00> : vector<8x32xf32>
    %63 = vector.multi_reduction <add>, %62, %cst_29 [1] : vector<8x8x32xf32> to vector<8x32xf32>
    %64 = tpu.concatenate %63, %59 in 1 : vector<8x32xf32>, vector<8x32xf32> -> vector<8x64xf32>
    %c0_30 = arith.constant 0 : index
    %c0_31 = arith.constant 0 : index
    %65 = vector.load %arg8[%c0_30, %c0_31] : memref<8x64xf32, #tpu.memory_space<vmem>>, vector<8x64xf32>
    tpu.vector_store %arg8[%c0_30, %c0_31], %64 {strides = array<i32>} : memref<8x64xf32, #tpu.memory_space<vmem>>, vector<8x64xf32>,
    return
  }
  func.func @transform_0(%arg0: i32) -> (i32, i32, i32) {
    %c0_i32 = arith.constant 0 : i32
    %c0_i32_0 = arith.constant 0 : i32
    %c0_i32_1 = arith.constant 0 : i32
    return %arg0, %c0_i32, %c0_i32_0 : i32, i32, i32
  }
  func.func @transform_1(%arg0: i32) -> (i32, i32, i32) {
    %c0_i32 = arith.constant 0 : i32
    %c0_i32_0 = arith.constant 0 : i32
    %c0_i32_1 = arith.constant 0 : i32
    return %arg0, %c0_i32, %c0_i32_0 : i32, i32, i32
  }
  func.func @transform_2(%arg0: i32) -> (i32, i32, i32) {
    %c0_i32 = arith.constant 0 : i32
    %c0_i32_0 = arith.constant 0 : i32
    %c0_i32_1 = arith.constant 0 : i32
    return %arg0, %c0_i32, %c0_i32_0 : i32, i32, i32
  }
  func.func @transform_3(%arg0: i32) -> (i32, i32, i32) {
    %c0_i32 = arith.constant 0 : i32
    %c0_i32_0 = arith.constant 0 : i32
    %c0_i32_1 = arith.constant 0 : i32
    return %arg0, %c0_i32, %c0_i32_0 : i32, i32, i32
  }
  func.func @transform_4(%arg0: i32) -> (i32, i32) {
    %c0_i32 = arith.constant 0 : i32
    %c0_i32_0 = arith.constant 0 : i32
    %c0_i32_1 = arith.constant 0 : i32
    return %c0_i32, %c0_i32_0 : i32, i32
  }
  func.func @transform_5(%arg0: i32) -> (i32, i32) {
    %c0_i32 = arith.constant 0 : i32
    %c0_i32_0 = arith.constant 0 : i32
    %c0_i32_1 = arith.constant 0 : i32
    return %c0_i32, %c0_i32_0 : i32, i32
  }
  func.func @transform_6(%arg0: i32) -> (i32, i32) {
    %c0_i32 = arith.constant 0 : i32
    %c0_i32_0 = arith.constant 0 : i32
    %c0_i32_1 = arith.constant 0 : i32
    return %c0_i32, %c0_i32_0 : i32, i32
  }
  func.func @transform_7(%arg0: i32) -> (i32, i32) {
    %c0_i32 = arith.constant 0 : i32
    %c0_i32_0 = arith.constant 0 : i32
    return %arg0, %c0_i32 : i32, i32
  }
}

</mosaic_0001>

<bundles_post_ra>
// kernel: parallel_co_attention.1
= control target key start
LH: loop header
LB: loop body
LE: loop exit
PB: predicated region body
PF: predicated region fallthrough
CT: control target
= control target key end

     0   :  { %v5064_v0 = vmov 0.0   ;;  %vm87_vm0 = vcmask 261120   ;;  %vm5065_vm1 = vmmov 0   ;;  %v6692_v47 = vmov 0   ;;  %s6684_s1 = inlined_call_operand.vmem [shape: f32[8,32,16], index: 1, kind: input, shape index: {}]   ;;  %s6685_s2 = inlined_call_operand.vmem [shape: f32[8,8,32], index: 2, kind: input, shape index: {}]   ;;  %s6686_s3 = inlined_call_operand.vmem [shape: f32[8,8,32], index: 3, kind: input, shape index: {}]   ;;  %s6687_s4 = inlined_call_operand.vmem [shape: f32[32,32], index: 4, kind: input, shape index: {}]   ;;  %s6688_s5 = inlined_call_operand.vmem [shape: f32[32,2], index: 5, kind: input, shape index: {}]   ;;  %s6689_s6 = inlined_call_operand.vmem [shape: f32[1,32], index: 6, kind: input, shape index: {}]   ;;  %s6690_s0 = inlined_call_operand.vmem [shape: f32[8,8,32], index: 0, kind: input, shape index: {}]   ;;  %s6691_s7 = inlined_call_operand.vmem [shape: f32[8,64], index: 7, kind: output, shape index: {}]  }
   0x1   :  { %4539 = vmatprep.subr.mxu0 %v5064_v0  ;;  %4550 = vmatprep.subr.mxu1 %v5064_v0  ;;  %v5113_v1 = vld [vmem:[%s6684_s1 + $0x18] sm:$0xff]  ;;  %v5123_v3 = vld [vmem:[%s6684_s1 + $0x10] sm:$0xff]  ;;  %v5137_v5 = vld [vmem:[%s6684_s1 + $0x8] sm:$0xff]  ;;  %vm1428_vm2 = vcmask 64512   ;;  %vm2541_vm3 = vcmask 130048   ;;  %vm3404_vm4 = vcmask 1041409  }
   0x2   :  { %v5118_v2 = vld [vmem:[%s6684_s1 + $0x38] sm:$0xff]  ;;  %4540 = vmatpush3.msra.mxu0 %v5113_v1  ;;  %v5130_v4 = vld [vmem:[%s6684_s1 + $0x30] sm:$0xff]  ;;  %v5142_v6 = vld [vmem:[%s6684_s1 + $0x28] sm:$0xff]  ;;  %4547 = vmatprep.mubr.msk.f32.mxu0 %vm5065_vm1, %v5064_v0  ;;  %vm3406_vm5 = vcmask 1042434   ;;  %vm3408_vm6 = vcmask 1043459   ;;  %vm3410_vm7 = vcmask 1044484  }
   0x3   :  { %4551 = vmatpush3.msra.mxu1 %v5118_v2  ;;  %4541 = vmatprep.subr.mxu0 %v5064_v0  ;;  %v5151_v7 = vld [vmem:[%s6684_s1] sm:$0xff]  ;;  %v67_v10 = vld [vmem:[%s6685_s2 + $0x8] sm:$0xff]  ;;  %v5177_v11 = vld [vmem:[%s6684_s1 + $0x58] sm:$0xff]  ;;  %vm3412_vm8 = vcmask 1045509   ;;  %vm3414_vm9 = vcmask 1046534   ;;  %vm3416_vm10 = vcmask 1047559  }
   0x4   :  { %4552 = vmatprep.subr.mxu1 %v5064_v0  ;;  %4542 = vmatpush3.msra.mxu0 %v5123_v3  ;;  %v5158_v8 = vld [vmem:[%s6684_s1 + $0x20] sm:$0xff]  ;;  %v5182_v12 = vld [vmem:[%s6684_s1 + $0x78] sm:$0xff]  ;;  %v5191_v13 = vld [vmem:[%s6684_s1 + $0x50] sm:$0xff]  ;;  %vm4078_vm11 = vcmask 392512   ;;  %vm4085_vm12 = vcmask 458112   ;;  %vm4092_vm13 = vcmask 523712  }
   0x5   :  { %4553 = vmatpush3.msra.mxu1 %v5130_v4  ;;  %4543 = vmatprep.subr.mxu0 %v5064_v0  ;;  %v66_v9 = vld [vmem:[%s6685_s2] sm:$0xff]  ;;  %v5196_v14 = vld [vmem:[%s6684_s1 + $0x70] sm:$0xff]  ;;  %v5205_v15 = vld [vmem:[%s6684_s1 + $0x48] sm:$0xff]  ;;  %vm4236_vm14 = vcmask 523264  }
   0x6   :  { %4554 = vmatprep.subr.mxu1 %v5064_v0  ;;  %4544 = vmatpush3.msra.mxu0 %v5137_v5  ;;  %v5210_v16 = vld [vmem:[%s6684_s1 + $0x68] sm:$0xff]  ;;  %v5219_v17 = vld [vmem:[%s6684_s1 + $0x40] sm:$0xff]  ;;  %v68_v19 = vld [vmem:[%s6685_s2 + $0x10] sm:$0xff] }
   0x7   :  { %4555 = vmatpush3.msra.mxu1 %v5142_v6  ;;  %4545 = vmatprep.subr.mxu0 %v5064_v0  ;;  %v5226_v18 = vld [vmem:[%s6684_s1 + $0x60] sm:$0xff]  ;;  %v69_v20 = vld [vmem:[%s6685_s2 + $0x18] sm:$0xff]  ;;  %v5259_v23 = vld [vmem:[%s6684_s1 + $0x90] sm:$0xff] }
   0x8   :  { %4556 = vmatprep.subr.mxu1 %v5064_v0  ;;  %4546 = vmatpush3.msra.mxu0 %v5151_v7  ;;  %v5245_v21 = vld [vmem:[%s6684_s1 + $0x98] sm:$0xff]  ;;  %v5264_v24 = vld [vmem:[%s6684_s1 + $0xb0] sm:$0xff]  ;;  %v5273_v25 = vld [vmem:[%s6684_s1 + $0x88] sm:$0xff] }
   0x9   :  { %4557 = vmatpush3.msra.mxu1 %v5158_v8  ;;  %4558 = vmatprep.mubr.msk.f32.mxu1 %vm5065_vm1, %v5064_v0  ;;  %v5250_v22 = vld [vmem:[%s6684_s1 + $0xb8] sm:$0xff]  ;;  %v5278_v26 = vld [vmem:[%s6684_s1 + $0xa8] sm:$0xff]  ;;  %v5287_v27 = vld [vmem:[%s6684_s1 + $0x80] sm:$0xff] }
   0xa   :  { %4548 = vmatmul.mubr.msk.f32.vlgmr.msra.gmra.mxu0 %vm87_vm0, %v66_v9  ;;  %4559 = vmatmul.mubr.msk.f32.vlgmr.msra.gmra.mxu1 %vm87_vm0, %v67_v10  ;;  %v5294_v28 = vld [vmem:[%s6684_s1 + $0xa0] sm:$0xff]  ;;  %v71_v30 = vld [vmem:[%s6685_s2 + $0x28] sm:$0xff]  ;;  %v5313_v31 = vld [vmem:[%s6684_s1 + $0xd8] sm:$0xff] }
   0xb   :  { %4561 = vmatprep.subr.mxu0 %v5064_v0  ;;  %4572 = vmatprep.subr.mxu1 %v5064_v0  ;;  %v70_v29 = vld [vmem:[%s6685_s2 + $0x20] sm:$0xff]  ;;  %v5318_v32 = vld [vmem:[%s6684_s1 + $0xf8] sm:$0xff]  ;;  %v5327_v33 = vld [vmem:[%s6684_s1 + $0xd0] sm:$0xff] }
   0xc   :  { %4562 = vmatpush3.msra.mxu0 %v5177_v11  ;;  %4573 = vmatpush3.msra.mxu1 %v5182_v12  ;;  %v5332_v34 = vld [vmem:[%s6684_s1 + $0xf0] sm:$0xff]  ;;  %v5339_v35 = vld [vmem:[%s6686_s3] sm:$0xff]  ;;  %v5346_v36 = vld [vmem:[%s6684_s1 + $0xc8] sm:$0xff] }
   0xd   :  { %4563 = vmatprep.subr.mxu0 %v5064_v0  ;;  %4574 = vmatprep.subr.mxu1 %v5064_v0  ;;  %v5353_v37 = vld [vmem:[%s6684_s1 + $0xe8] sm:$0xff]  ;;  %v5360_v38 = vld [vmem:[%s6684_s1 + $0xc0] sm:$0xff]  ;;  %v72_v40 = vld [vmem:[%s6685_s2 + $0x30] sm:$0xff] }
   0xe   :  { %4564 = vmatpush3.msra.mxu0 %v5191_v13  ;;  %4575 = vmatpush3.msra.mxu1 %v5196_v14  ;;  %v5367_v39 = vld [vmem:[%s6684_s1 + $0xe0] sm:$0xff]  ;;  %v73_v41 = vld [vmem:[%s6685_s2 + $0x38] sm:$0xff]  ;;  %v5407_v43 = vld [vmem:[%s6687_s4 + $0x8] sm:$0xff] }
   0xf   :  { %4565 = vmatprep.subr.mxu0 %v5064_v0  ;;  %4576 = vmatprep.subr.mxu1 %v5064_v0  ;;  %v5400_v42 = vld [vmem:[%s6687_s4] sm:$0xff]  ;;  %v5424_v44 = vld [vmem:[%s6687_s4 + $0x10] sm:$0xff]  ;;  %v5436_v45 = vld [vmem:[%s6686_s3 + $0x8] sm:$0xff] }
  0x10   :  { %4566 = vmatpush3.msra.mxu0 %v5205_v15  ;;  %4577 = vmatpush3.msra.mxu1 %v5210_v16  ;;  %v5441_v46 = vld [vmem:[%s6687_s4 + $0x18] sm:$0xff]  ;;  %v5474_v49 = vld [vmem:[%s6688_s5 + $0x10] sm:$0xff]  ;;  %v5495_v50 = vld [vmem:[%s6688_s5 + $0x8] sm:$0xff] }
  0x11   :  { %4567 = vmatprep.subr.mxu0 %v5064_v0  ;;  %4578 = vmatprep.subr.mxu1 %v5064_v0  ;;  %v5451_v48 = vld [vmem:[%s6688_s5 + $0x18] sm:$0xff]  ;;  %v5518_v51 = vld [vmem:[%s6688_s5] sm:$0xff]  ;;  %v5580_v54 = vld [vmem:[%s6686_s3 + $0x10] sm:$0xff] }
  0x12   :  { %4568 = vmatpush3.msra.mxu0 %v5219_v17  ;;  %4569 = vmatprep.mubr.msk.f32.mxu0 %vm5065_vm1, %v5064_v0  ;;  %v5533_v52 = vld [vmem:[%s6686_s3 + $0x18] sm:$0xff]  ;;  %v5570_v53 = vld [vmem:[%s6686_s3 + $0x20] sm:$0xff]  ;;  %v5585_v55 = vld [vmem:[%s6686_s3 + $0x28] sm:$0xff] }
  0x13   :  { %4579 = vmatpush3.msra.mxu1 %v5226_v18  ;;  %4580 = vmatprep.mubr.msk.f32.mxu1 %vm5065_vm1, %v5064_v0  ;;  %v5592_v56 = vld [vmem:[%s6686_s3 + $0x30] sm:$0xff]  ;;  %v5597_v57 = vld [vmem:[%s6686_s3 + $0x38] sm:$0xff] }
  0x14   :  { %4570 = vmatmul.mubr.msk.f32.vlgmr.msra.gmra.mxu0 %vm87_vm0, %v68_v19  ;;  %4581 = vmatmul.mubr.msk.f32.vlgmr.msra.gmra.mxu1 %vm87_vm0, %v69_v20 }
  0x15   :  { %4583 = vmatprep.subr.mxu0 %v5064_v0  ;;  %4594 = vmatprep.subr.mxu1 %v5064_v0 }
  0x16   :  { %4584 = vmatpush3.msra.mxu0 %v5245_v21  ;;  %4595 = vmatpush3.msra.mxu1 %v5250_v22 }
  0x17   :  { %4585 = vmatprep.subr.mxu0 %v5064_v0  ;;  %4596 = vmatprep.subr.mxu1 %v5064_v0 }
  0x18   :  { %4586 = vmatpush3.msra.mxu0 %v5259_v23  ;;  %4597 = vmatpush3.msra.mxu1 %v5264_v24 }
  0x19   :  { %4587 = vmatprep.subr.mxu0 %v5064_v0  ;;  %4598 = vmatprep.subr.mxu1 %v5064_v0 }
  0x1a   :  { %4588 = vmatpush3.msra.mxu0 %v5273_v25  ;;  %4599 = vmatpush3.msra.mxu1 %v5278_v26 }
  0x1b   :  { %4589 = vmatprep.subr.mxu0 %v5064_v0  ;;  %4600 = vmatprep.subr.mxu1 %v5064_v0 }
  0x1c   :  { %4590 = vmatpush3.msra.mxu0 %v5287_v27  ;;  %4591 = vmatprep.mubr.msk.f32.mxu0 %vm5065_vm1, %v5064_v0 }
  0x1d   :  { %4601 = vmatpush3.msra.mxu1 %v5294_v28  ;;  %4602 = vmatprep.mubr.msk.f32.mxu1 %vm5065_vm1, %v5064_v0 }
  0x1e   :  { %4592 = vmatmul.mubr.msk.f32.vlgmr.msra.gmra.mxu0 %vm87_vm0, %v70_v29  ;;  %4603 = vmatmul.mubr.msk.f32.vlgmr.msra.gmra.mxu1 %vm87_vm0, %v71_v30 }
  0x1f   :  { %4605 = vmatprep.subr.mxu0 %v5064_v0  ;;  %4616 = vmatprep.subr.mxu1 %v5064_v0 }
  0x20   :  { %4606 = vmatpush3.msra.mxu0 %v5313_v31  ;;  %4617 = vmatpush3.msra.mxu1 %v5318_v32 }
  0x21   :  { %4607 = vmatprep.subr.mxu0 %v5064_v0  ;;  %4618 = vmatprep.subr.mxu1 %v5064_v0 }
  0x22   :  { %4608 = vmatpush3.msra.mxu0 %v5327_v33  ;;  %4619 = vmatpush3.msra.mxu1 %v5332_v34 }
  0x23   :  { %1396 = vxpose.xlu1.b32.start.end [1/1] (short) (narrow) %v5339_v35, 32  ;;  %4609 = vmatprep.subr.mxu0 %v5064_v0 }
  0x24   :  { %4620 = vmatprep.subr.mxu1 %v5064_v0  ;;  %4610 = vmatpush3.msra.mxu0 %v5346_v36 }
  0x25   :  { %4621 = vmatpush3.msra.mxu1 %v5353_v37  ;;  %4611 = vmatprep.subr.mxu0 %v5064_v0 }
  0x26   :  { %4622 = vmatprep.subr.mxu1 %v5064_v0  ;;  %4612 = vmatpush3.msra.mxu0 %v5360_v38 }
  0x27   :  { %4613 = vmatprep.mubr.msk.f32.mxu0 %vm5065_vm1, %v5064_v0  ;;  %4623 = vmatpush3.msra.mxu1 %v5367_v39 }
  0x28   :  { %4624 = vmatprep.mubr.msk.f32.mxu1 %vm5065_vm1, %v5064_v0  ;;  %4614 = vmatmul.mubr.msk.f32.vlgmr.msra.gmra.mxu0 %vm87_vm0, %v72_v40 }
  0x29   :  { %4625 = vmatmul.mubr.msk.f32.vlgmr.msra.gmra.mxu1 %vm87_vm0, %v73_v41  ;;  %4627 = vmatprep.subr.mxu0 %v5113_v1 }
  0x2a   :  { %4641 = vmatprep.subr.mxu1 %v5118_v2  ;;  %4628 = vmatpush3.msra.mxu0 %v5113_v1 }
  0x2b   :  { %4642 = vmatpush3.msra.mxu1 %v5118_v2  ;;  %4629 = vmatprep.subr.mxu0 %v5123_v3 }
  0x2c   :  { %4643 = vmatprep.subr.mxu1 %v5130_v4  ;;  %4630 = vmatpush3.msra.mxu0 %v5123_v3 }
  0x2d   :  { %4644 = vmatpush3.msra.mxu1 %v5130_v4  ;;  %4631 = vmatprep.subr.mxu0 %v5137_v5 }
  0x2e   :  { %4645 = vmatprep.subr.mxu1 %v5142_v6  ;;  %4632 = vmatpush3.msra.mxu0 %v5137_v5 }
  0x2f   :  { %4646 = vmatpush3.msra.mxu1 %v5142_v6  ;;  %4633 = vmatprep.subr.mxu0 %v5151_v7 }
  0x30   :  { %4647 = vmatprep.subr.mxu1 %v5158_v8  ;;  %4634 = vmatpush3.msra.mxu0 %v5151_v7 }
  0x31   :  { %4635 = vmatprep.mubr.msk.f32.mxu0 %vm87_vm0, %v5400_v42  ;;  %4648 = vmatpush3.msra.mxu1 %v5158_v8 }
  0x32   :  { %4649 = vmatprep.mubr.msk.f32.mxu1 %vm87_vm0, %v5400_v42  ;;  %4636 = vmatmul.mubr.msk.f32.vlgmr.msra.gmra.mxu0 %vm87_vm0, %v5407_v43 }
  0x33   :  { %4650 = vmatmul.mubr.msk.f32.vlgmr.msra.gmra.mxu1 %vm87_vm0, %v5407_v43  ;;  %4655 = vmatprep.subr.mxu0 %v5177_v11 }
  0x34   :  { %4669 = vmatprep.subr.mxu1 %v5182_v12  ;;  %4656 = vmatpush3.msra.mxu0 %v5177_v11 }
  0x35   :  { %4670 = vmatpush3.msra.mxu1 %v5182_v12  ;;  %4657 = vmatprep.subr.mxu0 %v5191_v13 }
  0x36   :  { %4671 = vmatprep.subr.mxu1 %v5196_v14  ;;  %4638 = vmatprep.mubr.msk.f32.mxu0 %vm87_vm0, %v5424_v44 }
  0x37   :  { %4652 = vmatprep.mubr.msk.f32.mxu1 %vm87_vm0, %v5424_v44  ;;  %4658 = vmatpush3.msra.mxu0 %v5191_v13 }
  0x38   :  { %4672 = vmatpush3.msra.mxu1 %v5196_v14  ;;  %4895 = vset.pattern.permute.xlu0 %v6692_v47 }
  0x39   :  { %1526 = vxpose.xlu1.b32.start.end [1/1] (short) (narrow) %v5436_v45, 32  ;;  %4639 = vmatmul.mubr.msk.f32.gmra.mxu0 %vm87_vm0, %v5441_v46 }
  0x3a   :  { %4653 = vmatmul.mubr.msk.f32.gmra.mxu1 %vm87_vm0, %v5441_v46  ;;  %4659 = vmatprep.subr.mxu0 %v5205_v15 }
  0x3b   :  { %4673 = vmatprep.subr.mxu1 %v5210_v16  ;;  %701 = vperm.xlu0 %4895, %v5451_v48  }
  0x3c   :  { %4660 = vmatpush3.msra.mxu0 %v5205_v15  ;;  %4674 = vmatpush3.msra.mxu1 %v5210_v16 }
  0x3d   :  { %4661 = vmatprep.subr.mxu0 %v5219_v17  ;;  %4675 = vmatprep.subr.mxu1 %v5226_v18 }
  0x3e   :  { %4662 = vmatpush3.msra.mxu0 %v5219_v17  ;;  %4663 = vmatprep.mubr.msk.f32.mxu0 %vm87_vm0, %v5400_v42 }
  0x3f   :  { %4676 = vmatpush3.msra.mxu1 %v5226_v18  ;;  %4677 = vmatprep.mubr.msk.f32.mxu1 %vm87_vm0, %v5400_v42 }
  0x40   :  { %4664 = vmatmul.mubr.msk.f32.vlgmr.msra.gmra.mxu0 %vm87_vm0, %v5407_v43  ;;  %4678 = vmatmul.mubr.msk.f32.vlgmr.msra.gmra.mxu1 %vm87_vm0, %v5407_v43 }
  0x41   :  { %4683 = vmatprep.subr.mxu0 %v5245_v21  ;;  %4697 = vmatprep.subr.mxu1 %v5250_v22 }
  0x42   :  { %696 = vperm.xlu0 %4895, %v5474_v49   ;;  %4684 = vmatpush3.msra.mxu0 %v5245_v21 }
  0x43   :  { %4698 = vmatpush3.msra.mxu1 %v5250_v22  ;;  %4685 = vmatprep.subr.mxu0 %v5259_v23 }
  0x44   :  { %4699 = vmatprep.subr.mxu1 %v5264_v24  ;;  %4666 = vmatprep.mubr.msk.f32.mxu0 %vm87_vm0, %v5424_v44 }
  0x45   :  { %4680 = vmatprep.mubr.msk.f32.mxu1 %vm87_vm0, %v5424_v44  ;;  %4686 = vmatpush3.msra.mxu0 %v5259_v23 }
  0x46   :  { %4700 = vmatpush3.msra.mxu1 %v5264_v24  ;;  %4667 = vmatmul.mubr.msk.f32.gmra.mxu0 %vm87_vm0, %v5441_v46 }
  0x47   :  { %4681 = vmatmul.mubr.msk.f32.gmra.mxu1 %vm87_vm0, %v5441_v46  ;;  %4687 = vmatprep.subr.mxu0 %v5273_v25 }
  0x48   :  { %4701 = vmatprep.subr.mxu1 %v5278_v26  ;;  %691 = vperm.xlu0 %4895, %v5495_v50  }
  0x49   :  { %4688 = vmatpush3.msra.mxu0 %v5273_v25  ;;  %4702 = vmatpush3.msra.mxu1 %v5278_v26 }
  0x4a   :  { %4689 = vmatprep.subr.mxu0 %v5287_v27  ;;  %4703 = vmatprep.subr.mxu1 %v5294_v28 }
  0x4b   :  { %4690 = vmatpush3.msra.mxu0 %v5287_v27  ;;  %4691 = vmatprep.mubr.msk.f32.mxu0 %vm87_vm0, %v5400_v42 }
  0x4c   :  { %4704 = vmatpush3.msra.mxu1 %v5294_v28  ;;  %4705 = vmatprep.mubr.msk.f32.mxu1 %vm87_vm0, %v5400_v42 }
  0x4d   :  { %4692 = vmatmul.mubr.msk.f32.vlgmr.msra.gmra.mxu0 %vm87_vm0, %v5407_v43  ;;  %4706 = vmatmul.mubr.msk.f32.vlgmr.msra.gmra.mxu1 %vm87_vm0, %v5407_v43 }
  0x4e   :  { %4711 = vmatprep.subr.mxu0 %v5313_v31  ;;  %4725 = vmatprep.subr.mxu1 %v5318_v32 }
  0x4f   :  { %686 = vperm.xlu0 %4895, %v5518_v51   ;;  %4712 = vmatpush3.msra.mxu0 %v5313_v31 }
  0x50   :  { %4726 = vmatpush3.msra.mxu1 %v5318_v32  ;;  %4713 = vmatprep.subr.mxu0 %v5327_v33 }
  0x51   :  { %4727 = vmatprep.subr.mxu1 %v5332_v34  ;;  %4694 = vmatprep.mubr.msk.f32.mxu0 %vm87_vm0, %v5424_v44 }
  0x52   :  { %4708 = vmatprep.mubr.msk.f32.mxu1 %vm87_vm0, %v5424_v44  ;;  %4714 = vmatpush3.msra.mxu0 %v5327_v33 }
  0x53   :  { %4728 = vmatpush3.msra.mxu1 %v5332_v34  ;;  %1784 = vxpose.xlu1.b32.start.end [1/1] (short) (narrow) %v5533_v52, 32 }
  0x54   :  { %4695 = vmatmul.mubr.msk.f32.gmra.mxu0 %vm87_vm0, %v5441_v46  ;;  %4709 = vmatmul.mubr.msk.f32.gmra.mxu1 %vm87_vm0, %v5441_v46 }
  0x55   :  { %4715 = vmatprep.subr.mxu0 %v5346_v36  ;;  %4729 = vmatprep.subr.mxu1 %v5353_v37 }
  0x56   :  { %4716 = vmatpush3.msra.mxu0 %v5346_v36  ;;  %4730 = vmatpush3.msra.mxu1 %v5353_v37 }
  0x57   :  { %4717 = vmatprep.subr.mxu0 %v5360_v38  ;;  %4731 = vmatprep.subr.mxu1 %v5367_v39 }
  0x58   :  { %4718 = vmatpush3.msra.mxu0 %v5360_v38  ;;  %4719 = vmatprep.mubr.msk.f32.mxu0 %vm87_vm0, %v5400_v42 }
  0x59   :  { %4732 = vmatpush3.msra.mxu1 %v5367_v39  ;;  %4733 = vmatprep.mubr.msk.f32.mxu1 %vm87_vm0, %v5400_v42 }
  0x5a   :  { %4720 = vmatmul.mubr.msk.f32.vlgmr.msra.gmra.mxu0 %vm87_vm0, %v5407_v43  ;;  %4734 = vmatmul.mubr.msk.f32.vlgmr.msra.gmra.mxu1 %vm87_vm0, %v5407_v43 }
  0x5b   :  { %4722 = vmatprep.mubr.msk.f32.mxu0 %vm87_vm0, %v5424_v44  ;;  %4736 = vmatprep.mubr.msk.f32.mxu1 %vm87_vm0, %v5424_v44 }
  0x5e   :  { %4723 = vmatmul.mubr.msk.f32.gmra.mxu0 %vm87_vm0, %v5441_v46  ;;  %4737 = vmatmul.mubr.msk.f32.gmra.mxu1 %vm87_vm0, %v5441_v46 }
  0x60   :  { %1913 = vxpose.xlu1.b32.start.end [1/1] (short) (narrow) %v5570_v53, 32 }
  0x6d   :  { %1655 = vxpose.xlu0.b32.start.end [1/1] (short) (narrow) %v5580_v54, 32  ;;  %2042 = vxpose.xlu1.b32.start.end [1/1] (short) (narrow) %v5585_v55, 32 }
  0x7a   :  { %2171 = vxpose.xlu0.b32.start.end [1/1] (short) (narrow) %v5592_v56, 32  ;;  %2300 = vxpose.xlu1.b32.start.end [1/1] (short) (narrow) %v5597_v57, 32 }
  0x9f   :  { %v1412_v58 = vpop.trf.xlu1 }
  0xa0   :  { %4741 = vmatprep.mubr.msk.f32.mxu0 %vm1428_vm2, %v1412_v58 }
  0xa3   :  { %v1413_v59 = vpop.trf.xlu1 }
  0xa7   :  { %v1414_v60 = vpop.trf.xlu1 }
  0xab   :  { %v1415_v61 = vpop.trf.xlu1 }
  0xb5   :  { %v1542_v62 = vpop.trf.xlu1 }
  0xb6   :  { %4749 = vmatprep.mubr.msk.f32.mxu1 %vm1428_vm2, %v1542_v62  ;;  %v5603_v8 = vpop.permute.xlu0 %701 }
  0xb9   :  { %v1543_v63 = vpop.trf.xlu1 }
  0xbd   :  { %v1544_v1 = vpop.trf.xlu1  ;;  %v5609_v17 = vpop.permute.xlu0 %696 }
  0xc1   :  { %v1545_v2 = vpop.trf.xlu1 }
  0xc3   :  { %v5619_v21 = vpop.permute.xlu0 %691 }
  0xca   :  { %v157_v3 = vpop.f32.mrf.mxu0  ;;  %v230_v4 = vpop.f32.mrf.mxu1 }
  0xcb   :  { %4900 = vtanh.f32 %v157_v3  ;;  %v5631_v28 = vpop.permute.xlu0 %686 }
  0xcc   :  { %4902 = vtanh.f32 %v230_v4  ;;  %v4549_v5 = vpop.f32.mrf.mxu0  ;;  %v4560_v6 = vpop.f32.mrf.mxu1 }
  0xcf   :  { %v1800_v7 = vpop.trf.xlu1 }
  0xd3   :  { %v1801_v9 = vpop.trf.xlu1 }
  0xd4   :  { %v303_v10 = vpop.f32.mrf.mxu0  ;;  %v376_v11 = vpop.f32.mrf.mxu1 }
  0xd5   :  { %4904 = vtanh.f32 %v303_v10 }
  0xd6   :  { %4906 = vtanh.f32 %v376_v11  ;;  %v4571_v12 = vpop.f32.mrf.mxu0  ;;  %v4582_v13 = vpop.f32.mrf.mxu1 }
  0xd7   :  { %v1802_v14 = vpop.trf.xlu1 }
  0xd8   :  { %v5605_v15 = vpop.eup %4900 }
  0xd9   :  { %v5607_v16 = vpop.eup %4902  ;;  %4739 = vmatprep.subr.mxu0 %v5605_v15 }
  0xda   :  { %4747 = vmatprep.subr.mxu1 %v5607_v16  ;;  %4740 = vmatpush3.msra.mxu0 %v5605_v15 }
  0xdb   :  { %v1803_v18 = vpop.trf.xlu1  ;;  %4748 = vmatpush3.msra.mxu1 %v5607_v16  ;;  %4742 = vmatmul.mubr.msk.f32.vlgmr.msra.gmra.mxu0 %vm1428_vm2, %v1413_v59 }
  0xdc   :  { %4750 = vmatmul.mubr.msk.f32.vlgmr.msra.gmra.mxu1 %vm1428_vm2, %v1543_v63  ;;  %4744 = vmatprep.mubr.msk.f32.mxu0 %vm1428_vm2, %v1414_v60 }
  0xdd   :  { %4752 = vmatprep.mubr.msk.f32.mxu1 %vm1428_vm2, %v1544_v1 }
  0xde   :  { %v449_v19 = vpop.f32.mrf.mxu0  ;;  %v522_v20 = vpop.f32.mrf.mxu1 }
  0xdf   :  { %v1929_v22 = vpop.trf.xlu1  ;;  %4908 = vtanh.f32 %v449_v19  ;;  %4745 = vmatmul.mubr.msk.f32.gmra.mxu0 %vm1428_vm2, %v1415_v61 }
  0xe0   :  { %4910 = vtanh.f32 %v522_v20  ;;  %v4593_v23 = vpop.f32.mrf.mxu0  ;;  %v4604_v24 = vpop.f32.mrf.mxu1  ;;  %4753 = vmatmul.mubr.msk.f32.gmra.mxu1 %vm1428_vm2, %v1545_v2 }
  0xe1   :  { %4765 = vmatprep.mubr.msk.f32.mxu1 %vm1428_vm2, %v1800_v7 }
  0xe2   :  { %v5624_v25 = vpop.eup %4904 }
  0xe3   :  { %v5626_v26 = vpop.eup %4906  ;;  %v1930_v27 = vpop.trf.xlu1  ;;  %4755 = vmatprep.subr.mxu0 %v5624_v25 }
  0xe4   :  { %4763 = vmatprep.subr.mxu1 %v5626_v26  ;;  %4756 = vmatpush3.msra.mxu0 %v5624_v25 }
  0xe5   :  { %4764 = vmatpush3.msra.mxu1 %v5626_v26 }
  0xe6   :  { %4766 = vmatmul.mubr.msk.f32.vlgmr.msra.gmra.mxu1 %vm1428_vm2, %v1801_v9 }
  0xe7   :  { %v1931_v29 = vpop.trf.xlu1  ;;  %4768 = vmatprep.mubr.msk.f32.mxu1 %vm1428_vm2, %v1802_v14 }
  0xe8   :  { %v595_v30 = vpop.f32.mrf.mxu0 }
  0xe9   :  { %v1671_v31 = vpop.trf.xlu0  ;;  %4912 = vtanh.f32 %v595_v30  ;;  %v668_v32 = vpop.f32.mrf.mxu1 }
  0xea   :  { %4914 = vtanh.f32 %v668_v32  ;;  %4757 = vmatprep.mubr.msk.f32.mxu0 %vm1428_vm2, %v1671_v31  ;;  %v4615_v33 = vpop.f32.mrf.mxu0  ;;  %4769 = vmatmul.mubr.msk.f32.gmra.mxu1 %vm1428_vm2, %v1803_v18 }
  0xeb   :  { %v1932_v34 = vpop.trf.xlu1  ;;  %v4626_v36 = vpop.f32.mrf.mxu1 }
  0xec   :  { %v5638_v37 = vpop.eup %4908 }
  0xed   :  { %v5640_v38 = vpop.eup %4910  ;;  %v1672_v39 = vpop.trf.xlu0  ;;  %4771 = vmatprep.subr.mxu0 %v5638_v37 }
  0xee   :  { %4758 = vmatmul.mubr.msk.f32.vlgmr.msra.gmra.mxu0 %vm1428_vm2, %v1672_v39  ;;  %4779 = vmatprep.subr.mxu1 %v5640_v38 }
  0xef   :  { %v2058_v40 = vpop.trf.xlu1  ;;  %4772 = vmatpush3.msra.mxu0 %v5638_v37  ;;  %4780 = vmatpush3.msra.mxu1 %v5640_v38 }
  0xf0   :  { %4781 = vmatprep.mubr.msk.f32.mxu1 %vm1428_vm2, %v2058_v40 }
  0xf1   :  { %v1673_v41 = vpop.trf.xlu0 }
  0xf2   :  { %4760 = vmatprep.mubr.msk.f32.mxu0 %vm1428_vm2, %v1673_v41  ;;  %v4637_v46 = vpop.f32.mrf.mxu0 }
  0xf3   :  { %v2059_v42 = vpop.trf.xlu1  ;;  %v4651_v60 = vpop.f32.mrf.mxu1  ;;  %v5698_v23 = vadd.f32 %v4637_v46, %v5619_v21 }
  0xf4   :  { %4782 = vmatmul.mubr.msk.f32.vlgmr.msra.gmra.mxu1 %vm1428_vm2, %v2059_v42  ;;  %v782_v62 = vpop.f32.mrf.mxu0 }
  0xf5   :  { %v1674_v43 = vpop.trf.xlu0  ;;  %v867_v1 = vpop.f32.mrf.mxu1  ;;  %v5711_v31 = vadd.f32 %v782_v62, %v5631_v28 }
  0xf6   :  { %v5650_v44 = vpop.eup %4912  ;;  %4761 = vmatmul.mubr.msk.f32.gmra.mxu0 %vm1428_vm2, %v1674_v43  ;;  %v5719_v33 = vadd.f32 %v867_v1, %v5631_v28 }
  0xf7   :  { %v5653_v58 = vpop.eup %4914  ;;  %v2060_v59 = vpop.trf.xlu1  ;;  %4773 = vmatprep.mubr.msk.f32.mxu0 %vm1428_vm2, %v1929_v22  ;;  %4787 = vmatprep.subr.mxu0 %v5650_v44 }
  0xf8   :  { %4784 = vmatprep.mubr.msk.f32.mxu1 %vm1428_vm2, %v2060_v59  ;;  %4795 = vmatprep.subr.mxu1 %v5653_v58 }
  0xf9   :  { %v2187_v61 = vpop.trf.xlu0  ;;  %4796 = vmatpush3.msra.mxu1 %v5653_v58  ;;  %v4640_v3 = vpop.f32.mrf.mxu0 }
  0xfa   :  { %4774 = vmatmul.mubr.msk.f32.vlgmr.msra.gmra.mxu0 %vm1428_vm2, %v1930_v27  ;;  %4814 = vmatprep.subr.mxu1 %v5064_v0  ;;  %v4654_v5 = vpop.f32.mrf.mxu1  ;;  %v5670_v6 = vadd.f32 %v4640_v3, %v5603_v8  ;;  %v5704_v27 = vadd.f32 %v4651_v60, %v5619_v21 }
  0xfb   :  { %v2061_v63 = vpop.trf.xlu1  ;;  %4776 = vmatprep.mubr.msk.f32.mxu0 %vm1428_vm2, %v1931_v29  ;;  %4788 = vmatpush3.msra.mxu0 %v5650_v44  ;;  %v792_v9 = vpop.f32.mrf.mxu0  ;;  %v5674_v11 = vadd.f32 %v4654_v5, %v5603_v8 }
  0xfc   :  { %4785 = vmatmul.mubr.msk.f32.gmra.mxu1 %vm1428_vm2, %v2061_v63  ;;  %4803 = vmatprep.subr.mxu0 %v5064_v0  ;;  %v877_v12 = vpop.f32.mrf.mxu1  ;;  %v5682_v13 = vadd.f32 %v792_v9, %v5609_v17 }
  0xfd   :  { %v2188_v2 = vpop.trf.xlu0  ;;  %v5689_v19 = vadd.f32 %v877_v12, %v5609_v17 }
  0xfe   :  { %4777 = vmatmul.mubr.msk.f32.gmra.mxu0 %vm1428_vm2, %v1932_v34 }
  0xff   :  { %v2316_v4 = vpop.trf.xlu1  ;;  %4789 = vmatprep.mubr.msk.f32.mxu0 %vm1428_vm2, %v2187_v61 }
 0x100   :  { %4797 = vmatprep.mubr.msk.f32.mxu1 %vm1428_vm2, %v2316_v4  ;;  %v4665_v18 = vpop.f32.mrf.mxu0  ;;  %v4679_v22 = vpop.f32.mrf.mxu1 }
 0x101   :  { %v2189_v7 = vpop.trf.xlu0  ;;  %v5757_v46 = vadd.f32 %v4665_v18, %v5619_v21  ;;  %v5763_v60 = vadd.f32 %v4679_v22, %v5619_v21 }
 0x102   :  { %4790 = vmatmul.mubr.msk.f32.vlgmr.msra.gmra.mxu0 %vm1428_vm2, %v2188_v2  ;;  %v952_v24 = vpop.f32.mrf.mxu0  ;;  %v1037_v30 = vpop.f32.mrf.mxu1 }
 0x103   :  { %v2317_v10 = vpop.trf.xlu1  ;;  %4804 = vmatpush3.xpose.msk.msra.mxu0 %vm2541_vm3, %v5670_v6  ;;  %4792 = vmatprep.mubr.msk.f32.mxu0 %vm1428_vm2, %v2189_v7  ;;  %v5769_v62 = vadd.f32 %v952_v24, %v5631_v28  ;;  %v5775_v1 = vadd.f32 %v1037_v30, %v5631_v28 }
 0x104   :  { %4798 = vmatmul.mubr.msk.f32.vlgmr.msra.gmra.mxu1 %vm1428_vm2, %v2317_v10  ;;  %4805 = vmatprep.subr.mxu0 %v5064_v0 }
 0x105   :  { %4815 = vmatpush3.xpose.msk.msra.mxu1 %vm2541_vm3, %v5674_v11  ;;  %v2190_v14 = vpop.trf.xlu0 }
 0x106   :  { %4793 = vmatmul.mubr.msk.f32.gmra.mxu0 %vm1428_vm2, %v2190_v14  ;;  %4816 = vmatprep.subr.mxu1 %v5064_v0  ;;  %v4668_v32 = vpop.f32.mrf.mxu0 }
 0x107   :  { %v2318_v20 = vpop.trf.xlu1  ;;  %4806 = vmatpush3.xpose.msk.msra.mxu0 %vm2541_vm3, %v5682_v13  ;;  %4811 = vmatprep.mubr.msk.f32.mxu0 %vm5065_vm1, %v5064_v0  ;;  %v4682_v34 = vpop.f32.mrf.mxu1  ;;  %v5725_v36 = vadd.f32 %v4668_v32, %v5603_v8 }
 0x108   :  { %4800 = vmatprep.mubr.msk.f32.mxu1 %vm1428_vm2, %v2318_v20  ;;  %4807 = vmatprep.subr.mxu0 %v5064_v0  ;;  %v962_v39 = vpop.f32.mrf.mxu0  ;;  %v5733_v40 = vadd.f32 %v4682_v34, %v5603_v8 }
 0x109   :  { %4817 = vmatpush3.xpose.msk.msra.mxu1 %vm2541_vm3, %v5689_v19  ;;  %v1047_v41 = vpop.f32.mrf.mxu1  ;;  %v5743_v42 = vadd.f32 %v962_v39, %v5609_v17 }
 0x10a   :  { %4818 = vmatprep.subr.mxu1 %v5064_v0  ;;  %v5751_v43 = vadd.f32 %v1047_v41, %v5609_v17 }
 0x10b   :  { %v2319_v29 = vpop.trf.xlu1  ;;  %4808 = vmatpush3.xpose.msk.msra.mxu0 %vm2541_vm3, %v5698_v23 }
 0x10c   :  { %4801 = vmatmul.mubr.msk.f32.gmra.mxu1 %vm1428_vm2, %v2319_v29  ;;  %4809 = vmatprep.subr.mxu0 %v5064_v0 }
 0x10d   :  { %4819 = vmatpush3.xpose.msk.msra.mxu1 %vm2541_vm3, %v5704_v27  ;;  %4822 = vmatprep.mubr.msk.f32.mxu1 %vm5065_vm1, %v5064_v0 }
 0x10e   :  { %4820 = vmatprep.subr.mxu1 %v5064_v0 }
 0x10f   :  { %4810 = vmatpush3.xpose.msk.msra.mxu0 %vm2541_vm3, %v5711_v31 }
 0x110   :  { %4825 = vmatprep.subr.mxu0 %v5064_v0 }
 0x111   :  { %4821 = vmatpush3.xpose.msk.msra.mxu1 %vm2541_vm3, %v5719_v33 }
 0x112   :  { %4812 = vmatmul.mubr.msk.f32.vlgmr.msra.gmra.mxu0 %vm2541_vm3, %v5605_v15  ;;  %4836 = vmatprep.subr.mxu1 %v5064_v0  ;;  %v4693_v15 = vpop.f32.mrf.mxu0 }
 0x113   :  { %4826 = vmatpush3.xpose.msk.msra.mxu0 %vm2541_vm3, %v5725_v36  ;;  %4833 = vmatprep.mubr.msk.f32.mxu0 %vm5065_vm1, %v5064_v0  ;;  %v5813_v12 = vadd.f32 %v4693_v15, %v5619_v21 }
 0x114   :  { %4823 = vmatmul.mubr.msk.f32.vlgmr.msra.gmra.mxu1 %vm2541_vm3, %v5607_v16  ;;  %4827 = vmatprep.subr.mxu0 %v5064_v0  ;;  %v4707_v16 = vpop.f32.mrf.mxu1  ;;  %v1122_v59 = vpop.f32.mrf.mxu0 }
 0x115   :  { %4837 = vmatpush3.xpose.msk.msra.mxu1 %vm2541_vm3, %v5733_v40  ;;  %4844 = vmatprep.mubr.msk.f32.mxu1 %vm5065_vm1, %v5064_v0  ;;  %6711 = vst [vmem:[#allocation6_spill] sm:$0xff] %v5813_v12  ;;  %v5819_v18 = vadd.f32 %v4707_v16, %v5619_v21  ;;  %v5825_v22 = vadd.f32 %v1122_v59, %v5631_v28 }
 0x116   :  { %4838 = vmatprep.subr.mxu1 %v5064_v0  ;;  %v1207_v61 = vpop.f32.mrf.mxu1  ;;  %v4696_v63 = vpop.f32.mrf.mxu0 }
 0x117   :  { %4828 = vmatpush3.xpose.msk.msra.mxu0 %vm2541_vm3, %v5743_v42  ;;  %v5781_v3 = vadd.f32 %v4696_v63, %v5603_v8  ;;  %v5831_v29 = vadd.f32 %v1207_v61, %v5631_v28 }
 0x118   :  { %4829 = vmatprep.subr.mxu0 %v5064_v0  ;;  %v4710_v2 = vpop.f32.mrf.mxu1  ;;  %v1132_v4 = vpop.f32.mrf.mxu0 }
 0x119   :  { %4839 = vmatpush3.xpose.msk.msra.mxu1 %vm2541_vm3, %v5751_v43  ;;  %6707 = vst [vmem:[#allocation2_spill] sm:$0xff] %v5781_v3  ;;  %v5789_v5 = vadd.f32 %v4710_v2, %v5603_v8  ;;  %v5799_v9 = vadd.f32 %v1132_v4, %v5609_v17 }
 0x11a   :  { %4840 = vmatprep.subr.mxu1 %v5064_v0  ;;  %v1217_v7 = vpop.f32.mrf.mxu1 }
 0x11b   :  { %4830 = vmatpush3.xpose.msk.msra.mxu0 %vm2541_vm3, %v5757_v46  ;;  %6708 = vst [vmem:[#allocation3_spill] sm:$0xff] %v5789_v5  ;;  %6709 = vst [vmem:[#allocation4_spill] sm:$0xff] %v5799_v9  ;;  %v5807_v10 = vadd.f32 %v1217_v7, %v5609_v17 }
 0x11c   :  { %4831 = vmatprep.subr.mxu0 %v5064_v0 }
 0x11d   :  { %4841 = vmatpush3.xpose.msk.msra.mxu1 %vm2541_vm3, %v5763_v60  ;;  %6710 = vst [vmem:[#allocation5_spill] sm:$0xff] %v5807_v10 }
 0x11e   :  { %4842 = vmatprep.subr.mxu1 %v5064_v0 }
 0x11f   :  { %4832 = vmatpush3.xpose.msk.msra.mxu0 %vm2541_vm3, %v5769_v62 }
 0x120   :  { %4847 = vmatprep.subr.mxu0 %v5064_v0 }
 0x121   :  { %4843 = vmatpush3.xpose.msk.msra.mxu1 %vm2541_vm3, %v5775_v1 }
 0x122   :  { %4834 = vmatmul.mubr.msk.f32.vlgmr.msra.gmra.mxu0 %vm2541_vm3, %v5624_v25  ;;  %4858 = vmatprep.subr.mxu1 %v5064_v0  ;;  %v4721_v25 = vpop.f32.mrf.mxu0 }
 0x123   :  { %4848 = vmatpush3.xpose.msk.msra.mxu0 %vm2541_vm3, %v5781_v3  ;;  %4855 = vmatprep.mubr.msk.f32.mxu0 %vm5065_vm1, %v5064_v0 }
 0x124   :  { %4845 = vmatmul.mubr.msk.f32.vlgmr.msra.gmra.mxu1 %vm2541_vm3, %v5626_v26  ;;  %4849 = vmatprep.subr.mxu0 %v5064_v0  ;;  %v4735_v26 = vpop.f32.mrf.mxu1  ;;  %v1292_v14 = vpop.f32.mrf.mxu0 }
 0x125   :  { %4859 = vmatpush3.xpose.msk.msra.mxu1 %vm2541_vm3, %v5789_v5  ;;  %4866 = vmatprep.mubr.msk.f32.mxu1 %vm5065_vm1, %v5064_v0 }
 0x126   :  { %4860 = vmatprep.subr.mxu1 %v5064_v0  ;;  %v1377_v20 = vpop.f32.mrf.mxu1  ;;  %v4724_v24 = vpop.f32.mrf.mxu0 }
 0x127   :  { %4850 = vmatpush3.xpose.msk.msra.mxu0 %vm2541_vm3, %v5799_v9  ;;  %v5837_v32 = vadd.f32 %v4724_v24, %v5603_v8  ;;  %v5887_v16 = vadd.f32 %v1377_v20, %v5631_v28 }
 0x128   :  { %4851 = vmatprep.subr.mxu0 %v5064_v0  ;;  %v4738_v30 = vpop.f32.mrf.mxu1  ;;  %v1302_v34 = vpop.f32.mrf.mxu0 }
 0x129   :  { %4861 = vmatpush3.xpose.msk.msra.mxu1 %vm2541_vm3, %v5807_v10  ;;  %6712 = vst [vmem:[#allocation7_spill] sm:$0xff] %v5837_v32  ;;  %v5845_v39 = vadd.f32 %v4738_v30, %v5603_v8  ;;  %v5855_v15 = vadd.f32 %v1302_v34, %v5609_v17  ;;  %6719 = vst [vmem:[#allocation14_spill] sm:$0xff] %v5887_v16 }
 0x12a   :  { %4862 = vmatprep.subr.mxu1 %v5064_v0  ;;  %v1387_v41 = vpop.f32.mrf.mxu1 }
 0x12b   :  { %4852 = vmatpush3.xpose.msk.msra.mxu0 %vm2541_vm3, %v5813_v12  ;;  %6713 = vst [vmem:[#allocation8_spill] sm:$0xff] %v5845_v39  ;;  %6714 = vst [vmem:[#allocation9_spill] sm:$0xff] %v5855_v15  ;;  %v5863_v8 = vadd.f32 %v1387_v41, %v5609_v17  ;;  %v5881_v17 = vadd.f32 %v1292_v14, %v5631_v28 }
 0x12c   :  { %4853 = vmatprep.subr.mxu0 %v5064_v0 }
 0x12d   :  { %4863 = vmatpush3.xpose.msk.msra.mxu1 %vm2541_vm3, %v5819_v18  ;;  %6715 = vst [vmem:[#allocation10_spill] sm:$0xff] %v5863_v8  ;;  %6718 = vst [vmem:[#allocation13_spill] sm:$0xff] %v5881_v17 }
 0x12e   :  { %4864 = vmatprep.subr.mxu1 %v5064_v0 }
 0x12f   :  { %4854 = vmatpush3.xpose.msk.msra.mxu0 %vm2541_vm3, %v5825_v22 }
 0x130   :  { %4869 = vmatprep.subr.mxu0 %v5064_v0 }
 0x131   :  { %4865 = vmatpush3.xpose.msk.msra.mxu1 %vm2541_vm3, %v5831_v29 }
 0x132   :  { %4856 = vmatmul.mubr.msk.f32.vlgmr.msra.gmra.mxu0 %vm2541_vm3, %v5638_v37  ;;  %4880 = vmatprep.subr.mxu1 %v5064_v0  ;;  %v5869_v37 = vadd.f32 %v4721_v25, %v5619_v21 }
 0x133   :  { %4870 = vmatpush3.xpose.msk.msra.mxu0 %vm2541_vm3, %v5837_v32  ;;  %4877 = vmatprep.mubr.msk.f32.mxu0 %vm5065_vm1, %v5064_v0 }
 0x134   :  { %4867 = vmatmul.mubr.msk.f32.vlgmr.msra.gmra.mxu1 %vm2541_vm3, %v5640_v38  ;;  %4871 = vmatprep.subr.mxu0 %v5064_v0  ;;  %6716 = vst [vmem:[#allocation11_spill] sm:$0xff] %v5869_v37  ;;  %v5875_v38 = vadd.f32 %v4735_v26, %v5619_v21  ;;  %v5067_v21 = vmov 1  }
 0x135   :  { %4881 = vmatpush3.xpose.msk.msra.mxu1 %vm2541_vm3, %v5845_v39  ;;  %4888 = vmatprep.mubr.msk.f32.mxu1 %vm5065_vm1, %v5064_v0 }
 0x136   :  { %4882 = vmatprep.subr.mxu1 %v5064_v0  ;;  %6717 = vst [vmem:[#allocation12_spill] sm:$0xff] %v5875_v38  ;;  %4896 = vset.pattern.permute.xlu1 %v5067_v21 }
 0x137   :  { %4872 = vmatpush3.xpose.msk.msra.mxu0 %vm2541_vm3, %v5855_v15  ;;  %4897 = vset.pattern.permute.xlu0 %v5067_v21 }
 0x138   :  { %4873 = vmatprep.subr.mxu0 %v5064_v0 }
 0x139   :  { %4883 = vmatpush3.xpose.msk.msra.mxu1 %vm2541_vm3, %v5863_v8 }
 0x13a   :  { %4884 = vmatprep.subr.mxu1 %v5064_v0 }
 0x13b   :  { %4874 = vmatpush3.xpose.msk.msra.mxu0 %vm2541_vm3, %v5869_v37 }
 0x13c   :  { %4875 = vmatprep.subr.mxu0 %v5064_v0 }
 0x13d   :  { %4885 = vmatpush3.xpose.msk.msra.mxu1 %vm2541_vm3, %v5875_v38 }
 0x13e   :  { %4886 = vmatprep.subr.mxu1 %v5064_v0 }
 0x13f   :  { %4876 = vmatpush3.xpose.msk.msra.mxu0 %vm2541_vm3, %v5881_v17 }
 0x141   :  { %4887 = vmatpush3.xpose.msk.msra.mxu1 %vm2541_vm3, %v5887_v16 }
 0x142   :  { %4878 = vmatmul.mubr.msk.f32.vlgmr.msra.gmra.mxu0 %vm2541_vm3, %v5650_v44 }
 0x144   :  { %4889 = vmatmul.mubr.msk.f32.vlgmr.msra.gmra.mxu1 %vm2541_vm3, %v5653_v58 }
 0x19b   :  { %v5899_v0 = vpop.f32.mrf.mxu0 }
 0x19c   :  { %v5897_v59 = vpop.f32.mrf.mxu1 }
 0x19d   :  { %v5905_v63 = vpop.f32.mrf.mxu0 }
 0x19e   :  { %v5901_v28 = vpop.f32.mrf.mxu1 }
 0x19f   :  { %v5909_v4 = vpop.f32.mrf.mxu0 }
 0x1a0   :  { %v5903_v61 = vpop.f32.mrf.mxu1 }
 0x1a1   :  { %v5913_v58 = vpop.f32.mrf.mxu0 }
 0x1a2   :  { %v5907_v2 = vpop.f32.mrf.mxu1 }
 0x1a6   :  { %v5911_v44 = vpop.f32.mrf.mxu1 }
 0x1a8   :  { %v5915_v7 = vpop.f32.mrf.mxu1 }
 0x1aa   :  { %v5919_v26 = vpop.f32.mrf.mxu1 }
 0x1ac   :  { %v5923_v20 = vpop.f32.mrf.mxu1 }
 0x1ae   :  { %v5917_v25 = vpop.f32.mrf.mxu0 }
 0x1b0   :  { %v5921_v14 = vpop.f32.mrf.mxu0 }
 0x1b4   :  { %v5927_v30 = vpop.f32.mrf.mxu1 }
 0x1b6   :  { %v5925_v24 = vpop.f32.mrf.mxu0  ;;  %v5933_v21 = vpop.f32.mrf.mxu1 }
 0x1b8   :  { %v5929_v34 = vpop.f32.mrf.mxu0 }
 0x1ba   :  { %v5931_v41 = vpop.f32.mrf.mxu0 }
 0x1bb   :  { %6720 = vst [vmem:[#allocation15_spill] sm:$0xff] %v5931_v41 }
 0x1bc   :  { %v5935_v47 = vpop.f32.mrf.mxu0  ;;  %v5939_v39 = vpop.f32.mrf.mxu1 }
 0x1bd   :  { %6722 = vst [vmem:[#allocation17_spill] sm:$0xff] %v5939_v39 }
 0x1be   :  { %v5937_v8 = vpop.f32.mrf.mxu0  ;;  %v5943_v38 = vpop.f32.mrf.mxu1 }
 0x1bf   :  { %6721 = vst [vmem:[#allocation16_spill] sm:$0xff] %v5937_v8  ;;  %6724 = vst [vmem:[#allocation19_spill] sm:$0xff] %v5943_v38 }
 0x1c0   :  { %v5941_v32 = vpop.f32.mrf.mxu0 }
 0x1c1   :  { %6723 = vst [vmem:[#allocation18_spill] sm:$0xff] %v5941_v32 }
 0x1c2   :  { %v5945_v37 = vpop.f32.mrf.mxu0 }
 0x1c3   :  { %6725 = vst [vmem:[#allocation20_spill] sm:$0xff] %v5945_v37 }
 0x1c4   :  { %v5947_v3 = vpop.f32.mrf.mxu1  ;;  %v5949_v5 = vpop.f32.mrf.mxu0 }
 0x1c5   :  { %6726 = vst [vmem:[#allocation21_spill] sm:$0xff] %v5947_v3  ;;  %6727 = vst [vmem:[#allocation22_spill] sm:$0xff] %v5949_v5 }
 0x1c6   :  { %v5951_v15 = vpop.f32.mrf.mxu1  ;;  %v5953_v10 = vpop.f32.mrf.mxu0 }
 0x1c7   :  { %6728 = vst [vmem:[#allocation23_spill] sm:$0xff] %v5951_v15  ;;  %6729 = vst [vmem:[#allocation24_spill] sm:$0xff] %v5953_v10  ;;  %v4354_v10 = vld [vmem:[%s6689_s6] ss:$0 sm:$0xff] }
 0x1c8   :  { %v5957_v16 = vpop.f32.mrf.mxu0 }
 0x1c9   :  { %6731 = vst [vmem:[#allocation26_spill] sm:$0xff] %v5957_v16 }
 0x1cc   :  { %v5955_v9 = vpop.f32.mrf.mxu1 }
 0x1cd   :  { %6730 = vst [vmem:[#allocation25_spill] sm:$0xff] %v5955_v9 }
 0x1ce   :  { %v5959_v8 = vpop.f32.mrf.mxu1 }
 0x1cf   :  { %6732 = vst [vmem:[#allocation27_spill] sm:$0xff] %v5959_v8 }
 0x1d2   :  { %v2735_v39 = vpop.f32.mrf.mxu0 }
 0x1d3   :  { %v3334_v32 = vadd.f32 %v2735_v39, %v5339_v35 }
 0x1d4   :  { %v2820_v38 = vpop.f32.mrf.mxu1  ;;  %v4813_v41 = vpop.f32.mrf.mxu0 }
 0x1d5   :  { %4916 = vtanh.f32 %v3334_v32  ;;  %v3335_v3 = vadd.f32 %v2820_v38, %v5436_v45 }
 0x1d6   :  { %v4824_v37 = vpop.f32.mrf.mxu1 }
 0x1d7   :  { %4918 = vtanh.f32 %v3335_v3 }
 0x1e2   :  { %v4917_v15 = vpop.eup %4916  ;;  %v2905_v9 = vpop.f32.mrf.mxu0 }
 0x1e3   :  { %v3336_v16 = vadd.f32 %v2905_v9, %v5580_v54  ;;  %v3356_v12 = vmul.f32 %v4917_v15, %v4354_v10 }
 0x1e4   :  { %v4919_v8 = vpop.eup %4918  ;;  %v2990_v5 = vpop.f32.mrf.mxu1 }
 0x1e5   :  { %v4835_v17 = vpop.f32.mrf.mxu0  ;;  %4920 = vtanh.f32 %v3336_v16  ;;  %v3337_v35 = vadd.f32 %v2990_v5, %v5533_v52  ;;  %v3357_v32 = vmul.f32 %v4919_v8, %v4354_v10  ;;  %v3364_v45 = vsel %vm87_vm0, %v3356_v12, 0.0 }
 0x1e6   :  { %v4846_v39 = vpop.f32.mrf.mxu1  ;;  %3365 = vadd.xlane.f32.xlu0 %v3364_v45 }
 0x1e7   :  { %4922 = vtanh.f32 %v3337_v35  ;;  %v3367_v3 = vsel %vm87_vm0, %v3357_v32, 0.0 }
 0x1e8   :  { %3368 = vadd.xlane.f32.xlu1 %v3367_v3 }
 0x1f2   :  { %v4921_v37 = vpop.eup %4920  ;;  %v3075_v38 = vpop.f32.mrf.mxu0 }
 0x1f3   :  { %v3338_v54 = vadd.f32 %v3075_v38, %v5570_v53  ;;  %v3358_v9 = vmul.f32 %v4921_v37, %v4354_v10 }
 0x1f4   :  { %v4923_v15 = vpop.eup %4922  ;;  %v3160_v41 = vpop.f32.mrf.mxu1 }
 0x1f5   :  { %v4857_v17 = vpop.f32.mrf.mxu0  ;;  %4924 = vtanh.f32 %v3338_v54  ;;  %v3339_v52 = vadd.f32 %v3160_v41, %v5585_v55  ;;  %v3370_v5 = vsel %vm87_vm0, %v3358_v9, 0.0  ;;  %v3359_v12 = vmul.f32 %v4923_v15, %v4354_v10 }
 0x1f6   :  { %v4868_v8 = vpop.f32.mrf.mxu1  ;;  %3371 = vadd.xlane.f32.xlu0 %v3370_v5 }
 0x1f7   :  { %4926 = vtanh.f32 %v3339_v52  ;;  %v3373_v16 = vsel %vm87_vm0, %v3359_v12, 0.0  ;;  %v2434_v8 = vadd.f32 %v5897_v59, %v5704_v27  ;;  %v2442_v27 = vadd.f32 %v5911_v44, %v5763_v60 }
 0x1f8   :  { %v2437_v60 = vadd.f32 %v5921_v14, %v5769_v62 }
 0x1fa   :  { %3374 = vadd.xlane.f32.xlu0 %v3373_v16  ;;  %v2429_v16 = vadd.f32 %v5905_v63, %v5711_v31  ;;  %v3521_v31 = vlaneseq }
 0x1fc   :  { %v6020_v59 = vshrl.u32 %v3521_v31, 7 }
 0x202   :  { %v4925_v35 = vpop.eup %4924  ;;  %v3245_v32 = vpop.f32.mrf.mxu0 }
 0x203   :  { %v3340_v53 = vadd.f32 %v3245_v32, %v5592_v56  ;;  %v3360_v45 = vmul.f32 %v4925_v35, %v4354_v10 }
 0x204   :  { %v4927_v39 = vpop.eup %4926  ;;  %v3330_v3 = vpop.f32.mrf.mxu1 }
 0x205   :  { %v4879_v37 = vpop.f32.mrf.mxu0  ;;  %4928 = vtanh.f32 %v3340_v53  ;;  %v3341_v55 = vadd.f32 %v3330_v3, %v5597_v57  ;;  %v3361_v38 = vmul.f32 %v4927_v39, %v4354_v10  ;;  %v3376_v54 = vsel %vm87_vm0, %v3360_v45, 0.0  ;;  %v6742_v39 = vld [vmem:[#allocation5_spill] sm:$0xff]  ;;  %v6743_v3 = vld [vmem:[#allocation19_spill] sm:$0xff] }
 0x206   :  { %v4890_v9 = vpop.f32.mrf.mxu1  ;;  %3377 = vadd.xlane.f32.xlu1 %v3376_v54  ;;  %v6733_v57 = vmov 0   ;;  %v2451_v37 = vadd.f32 %v6743_v3, %v6742_v39  ;;  %v6744_v54 = vld [vmem:[#allocation9_spill] sm:$0xff] }
 0x207   :  { %4930 = vtanh.f32 %v3341_v55  ;;  %v3379_v15 = vsel %vm87_vm0, %v3361_v38, 0.0  ;;  %v6745_v9 = vld [vmem:[#allocation26_spill] sm:$0xff] }
 0x208   :  { %3380 = vadd.xlane.f32.xlu0 %v3379_v15  ;;  %v2455_v15 = vadd.f32 %v6745_v9, %v6744_v54 }
 0x212   :  { %v4929_v41 = vpop.eup %4928 }
 0x213   :  { %v3362_v17 = vmul.f32 %v4929_v41, %v4354_v10 }
 0x214   :  { %v4931_v52 = vpop.eup %4930 }
 0x215   :  { %v3363_v56 = vmul.f32 %v4931_v52, %v4354_v10  ;;  %v3382_v5 = vsel %vm87_vm0, %v3362_v17, 0.0  ;;  %v2430_v10 = vadd.f32 %v5899_v0, %v5698_v23  ;;  %v2435_v23 = vadd.f32 %v5907_v2, %v5689_v19  ;;  %v6746_v52 = vld [vmem:[#allocation3_spill] sm:$0xff] }
 0x216   :  { %3383 = vadd.xlane.f32.xlu1 %v3382_v5  ;;  %v2438_v19 = vadd.f32 %v5917_v25, %v5757_v46  ;;  %v2449_v46 = vadd.f32 %v5933_v21, %v5831_v29  ;;  %v6734_v29 = vld [vmem:[#allocation13_spill] sm:$0xff] }
 0x217   :  { %v3385_v12 = vsel %vm87_vm0, %v3363_v56, 0.0  ;;  %4932 = vtanh.f32 %v2430_v10  ;;  %v6747_v56 = vld [vmem:[#allocation17_spill] sm:$0xff] }
 0x218   :  { %3386 = vadd.xlane.f32.xlu0 %v3385_v12  ;;  %4934 = vtanh.f32 %v2434_v8  ;;  %v2452_v5 = vadd.f32 %v6747_v56, %v6746_v52  ;;  %v6748_v8 = vld [vmem:[#allocation2_spill] sm:$0xff] }
 0x219   :  { %4936 = vtanh.f32 %v2429_v16  ;;  %v6749_v16 = vld [vmem:[#allocation16_spill] sm:$0xff] }
 0x224   :  { %v6028_v62 = vpop.eup %4932 }
 0x227   :  { %2494 = vperm.xlu1 %4896, %v5518_v51   ;;  %v2431_v51 = vadd.f32 %v5913_v58, %v5682_v13  ;;  %v2443_v13 = vadd.f32 %v5923_v20, %v5751_v43  ;;  %v2440_v43 = vadd.f32 %v5925_v24, %v5725_v36 }
 0x22b   :  { %2502 = vperm.xlu1 %4896, %v5474_v49   ;;  %v2433_v49 = vadd.f32 %v5901_v28, %v5719_v33  ;;  %v6032_v28 = vpop.eup %4934 }
 0x22c   :  { %v6042_v2 = vpop.eup %4936 }
 0x22d   :  { %4938 = vtanh.f32 %v2433_v49  ;;  %v2448_v49 = vadd.f32 %v6749_v16, %v6748_v8 }
 0x22e   :  { %2498 = vperm.xlu0 %4897, %v5495_v50   ;;  %v2436_v50 = vadd.f32 %v5903_v61, %v5674_v11  ;;  %v2444_v11 = vadd.f32 %v5919_v26, %v5733_v40  ;;  %v6018_v40 = vand.u32 127, %v3521_v31  ;;  %v2445_v61 = vadd.f32 %v5935_v47, %v5825_v22  ;;  %v6738_v47 = vld [vmem:[#allocation14_spill] sm:$0xff]  ;;  %v6739_v22 = vld [vmem:[#allocation23_spill] sm:$0xff]  ;;  %v6752_v31 = vld [vmem:[#allocation12_spill] sm:$0xff] }
 0x22f   :  { %2506 = vperm.xlu1 %4896, %v5451_v48   ;;  %v2432_v48 = vadd.f32 %v5909_v4, %v5670_v6  ;;  %v2441_v6 = vadd.f32 %v5915_v7, %v5775_v1  ;;  %v2450_v1 = vadd.f32 %v5927_v30, %v5819_v18  ;;  %v2439_v18 = vadd.f32 %v5929_v34, %v5743_v42  ;;  %v6735_v4 = vld [vmem:[#allocation22_spill] sm:$0xff]  ;;  %v6737_v7 = vld [vmem:[#allocation15_spill] sm:$0xff]  ;;  %v6740_v30 = vld [vmem:[#allocation4_spill] sm:$0xff] }
 0x230   :  { %v6038_v36 = vsub.s32 %v6018_v40, %v6020_v59  ;;  %v2453_v44 = vadd.f32 %v6735_v4, %v6734_v29  ;;  %v6736_v42 = vld [vmem:[#allocation6_spill] sm:$0xff]  ;;  %v2457_v14 = vadd.f32 %v6739_v22, %v6738_v47  ;;  %v6755_v29 = vld [vmem:[#allocation24_spill] sm:$0xff]  ;;  %v6757_v22 = vld [vmem:[#allocation25_spill] sm:$0xff] }
 0x231   :  { %4940 = vtanh.f32 %v2432_v48  ;;  %v2446_v25 = vadd.f32 %v6737_v7, %v6736_v42  ;;  %v6741_v34 = vld [vmem:[#allocation18_spill] sm:$0xff]  ;;  %v6756_v47 = vld [vmem:[#allocation8_spill] sm:$0xff] }
 0x232   :  { %4899 = vset.pattern.permute.xlu0 %v6733_v57  ;;  %4942 = vtanh.f32 %v2436_v50  ;;  %v2447_v21 = vadd.f32 %v6741_v34, %v6740_v30 }
 0x233   :  { %4898 = vset.pattern.permute.xlu1 %v6733_v57  ;;  %4944 = vtanh.f32 %v2431_v51  ;;  %v6750_v51 = vld [vmem:[#allocation11_spill] sm:$0xff] }
 0x234   :  { %4946 = vtanh.f32 %v2435_v23  ;;  %v6751_v23 = vld [vmem:[#allocation20_spill] sm:$0xff] }
 0x235   :  { %4948 = vtanh.f32 %v2442_v27  ;;  %v2454_v27 = vadd.f32 %v6751_v23, %v6750_v51 }
 0x236   :  { %4950 = vtanh.f32 %v2441_v6 }
 0x237   :  { %4952 = vtanh.f32 %v2444_v11 }
 0x238   :  { %4954 = vtanh.f32 %v2443_v13  ;;  %v6753_v13 = vld [vmem:[#allocation21_spill] sm:$0xff] }
 0x239   :  { %4956 = vtanh.f32 %v2438_v19  ;;  %v2458_v19 = vadd.f32 %v6753_v13, %v6752_v31 }
 0x23a   :  { %4958 = vtanh.f32 %v2437_v60  ;;  %v6046_v58 = vpop.eup %4938 }
 0x23b   :  { %4960 = vtanh.f32 %v2450_v1 }
 0x23c   :  { %4962 = vtanh.f32 %v2440_v43 }
 0x23d   :  { %4964 = vtanh.f32 %v2449_v46 }
 0x23e   :  { %v6050_v26 = vpop.eup %4940  ;;  %4966 = vtanh.f32 %v2439_v18 }
 0x23f   :  { %v6056_v24 = vpop.eup %4942  ;;  %4968 = vtanh.f32 %v2445_v61  ;;  %v6754_v61 = vld [vmem:[#allocation7_spill] sm:$0xff] }
 0x240   :  { %v6066_v45 = vpop.eup %4944  ;;  %4970 = vtanh.f32 %v2453_v44  ;;  %v2456_v4 = vadd.f32 %v6755_v29, %v6754_v61 }
 0x241   :  { %v6072_v38 = vpop.eup %4946  ;;  %4972 = vtanh.f32 %v2446_v25 }
 0x242   :  { %v6078_v17 = vpop.eup %4948  ;;  %4974 = vtanh.f32 %v2457_v14  ;;  %v2460_v14 = vadd.f32 %v6757_v22, %v6756_v47 }
 0x243   :  { %v4951_v10 = vpop.eup %4950  ;;  %4976 = vtanh.f32 %v2447_v21 }
 0x244   :  { %v6089_v50 = vpop.eup %4952  ;;  %4978 = vtanh.f32 %v2451_v37 }
 0x245   :  { %v4955_v11 = vpop.eup %4954  ;;  %4980 = vtanh.f32 %v2455_v15 }
 0x246   :  { %v4957_v43 = vpop.eup %4956  ;;  %4982 = vtanh.f32 %v2452_v5 }
 0x247   :  { %v4959_v18 = vpop.eup %4958  ;;  %4984 = vtanh.f32 %v2448_v49 }
 0x248   :  { %v4961_v42 = vpop.eup %4960  ;;  %4986 = vtanh.f32 %v2454_v27 }
 0x249   :  { %v6106_v25 = vpop.eup %4962  ;;  %4988 = vtanh.f32 %v2458_v19 }
 0x24a   :  { %v4965_v21 = vpop.eup %4964  ;;  %4990 = vtanh.f32 %v2456_v4 }
 0x24b   :  { %4992 = vtanh.f32 %v2460_v14 }
 0x26f   :  { %v6010_v33 = vpop.xlane.xlu0 %3365 }
 0x270   :  { %v3526_v32 = vrot.slane %v6010_v33, %v6038_v36 }
 0x271   :  { %v6040_v63 = vpop.xlane.xlu1 %3368 }
 0x272   :  { %v3530_v35 = vrot.slane %v6040_v63, %v6038_v36 }
 0x274   :  { %v3555_v48 = vsel %vm3404_vm4, %v3530_v35, %v3526_v32  ;;  %v6758_v35 = vld [vmem:[#allocation10_spill] sm:$0xff]  ;;  %v6759_v32 = vld [vmem:[#allocation27_spill] sm:$0xff] }
 0x275   :  { %v2459_v39 = vadd.f32 %v6759_v32, %v6758_v35 }
 0x277   :  { %4994 = vtanh.f32 %v2459_v39 }
 0x27f   :  { %v6024_v0 = vpop.xlane.xlu0 %3371 }
 0x280   :  { %v3534_v55 = vrot.slane %v6024_v0, %v6038_v36 }
 0x282   :  { %v3556_v6 = vsel %vm3406_vm5, %v3534_v55, %v3555_v48  ;;  %v4967_v55 = vpop.eup %4966 }
 0x283   :  { %v6054_v20 = vpop.xlane.xlu0 %3374  ;;  %v4969_v9 = vpop.eup %4968 }
 0x284   :  { %v3538_v41 = vrot.slane %v6054_v20, %v6038_v36  ;;  %v4971_v5 = vpop.eup %4970 }
 0x285   :  { %v4973_v49 = vpop.eup %4972 }
 0x286   :  { %v3557_v60 = vsel %vm3408_vm6, %v3538_v41, %v3556_v6  ;;  %v4975_v23 = vpop.eup %4974 }
 0x287   :  { %v4977_v31 = vpop.eup %4976 }
 0x28f   :  { %v6064_v53 = vpop.xlane.xlu1 %3377 }
 0x290   :  { %v3542_v57 = vrot.slane %v6064_v53, %v6038_v36 }
 0x291   :  { %v6082_v12 = vpop.xlane.xlu0 %3380 }
 0x292   :  { %v3546_v1 = vrot.slane %v6082_v12, %v6038_v36  ;;  %v3558_v46 = vsel %vm3410_vm7, %v3542_v57, %v3557_v60 }
 0x294   :  { %v3559_v34 = vsel %vm3412_vm8, %v3546_v1, %v3558_v46  ;;  %v4979_v46 = vpop.eup %4978 }
 0x295   :  { %v4981_v47 = vpop.eup %4980 }
 0x29f   :  { %v6102_v44 = vpop.xlane.xlu1 %3383 }
 0x2a0   :  { %v3550_v7 = vrot.slane %v6102_v44, %v6038_v36 }
 0x2a1   :  { %v6110_v30 = vpop.xlane.xlu0 %3386 }
 0x2a2   :  { %v3554_v3 = vrot.slane %v6110_v30, %v6038_v36  ;;  %v3560_v37 = vsel %vm3414_vm9, %v3550_v7, %v3559_v34 }
 0x2a3   :  { %v2495_v54 = vpop.permute.xlu1 %2494 }
 0x2a4   :  { %v2509_v15 = vmul.f32 %v6042_v2, %v2495_v54  ;;  %v2513_v41 = vmul.f32 %v6046_v58, %v2495_v54  ;;  %v2517_v52 = vmul.f32 %v4959_v18, %v2495_v54  ;;  %v2521_v56 = vmul.f32 %v4951_v10, %v2495_v54 }
 0x2a5   :  { %v2525_v57 = vmul.f32 %v4969_v9, %v2495_v54  ;;  %v2529_v8 = vmul.f32 %v4965_v21, %v2495_v54  ;;  %v3561_v16 = vsel %vm3416_vm10, %v3554_v3, %v3560_v37  ;;  %v6121_v48 = vmul.f32 %v4971_v5, %v2495_v54  ;;  %v4983_v21 = vpop.eup %4982 }
 0x2a6   :  { %v2542_v51 = vsel %vm2541_vm3, %v2509_v15, 0.0  ;;  %v2555_v27 = vsel %vm2541_vm3, %v2513_v41, 0.0  ;;  %v2568_v2 = vsel %vm2541_vm3, %v2517_v52, 0.0  ;;  %v2581_v58 = vsel %vm2541_vm3, %v2521_v56, 0.0  ;;  %v4985_v39 = vpop.eup %4984 }
 0x2a7   :  { %v3563_v10 = vsel %vm1428_vm2, %v3561_v16, -inf  ;;  %v6128_v6 = vpop.permute.xlu1 %2502  ;;  %v2594_v13 = vsel %vm2541_vm3, %v2525_v57, 0.0  ;;  %v6133_v60 = vmul.f32 %v4975_v23, %v2495_v54  ;;  %v6136_v1 = vsel %vm2541_vm3, %v2529_v8, 0.0 }
 0x2a8   :  { %3564 = vmax.xlane.f32.xlu1 %v3563_v10  ;;  %v2511_v19 = vmul.f32 %v6066_v45, %v6128_v6  ;;  %v2515_v61 = vmul.f32 %v6072_v38, %v6128_v6  ;;  %v2519_v29 = vmul.f32 %v4967_v55, %v6128_v6  ;;  %v2523_v4 = vmul.f32 %v4955_v11, %v6128_v6 }
 0x2a9   :  { %v6138_v18 = vpop.permute.xlu0 %2498  ;;  %v2527_v7 = vmul.f32 %v4977_v31, %v6128_v6  ;;  %v2531_v11 = vmul.f32 %v4979_v46, %v6128_v6  ;;  %v6156_v32 = vmul.f32 %v4981_v47, %v6128_v6 }
 0x2aa   :  { %v2510_v45 = vmul.f32 %v6028_v62, %v6138_v18  ;;  %v2514_v22 = vmul.f32 %v6032_v28, %v6138_v18  ;;  %v2518_v14 = vmul.f32 %v4957_v43, %v6138_v18  ;;  %v2522_v34 = vmul.f32 %v6078_v17, %v6138_v18  ;;  %v4987_v17 = vpop.eup %4986 }
 0x2ab   :  { %v2526_v38 = vmul.f32 %v4973_v49, %v6138_v18  ;;  %v2530_v35 = vmul.f32 %v4961_v42, %v6138_v18  ;;  %v6162_v42 = vpop.permute.xlu1 %2506  ;;  %v4989_v15 = vpop.eup %4988  ;;  %v2545_v41 = vsel %vm2541_vm3, %v2511_v19, 0.0  ;;  %v2558_v52 = vsel %vm2541_vm3, %v2515_v61, 0.0 }
 0x2ac   :  { %v2543_v62 = vsel %vm2541_vm3, %v2510_v45, 0.0  ;;  %v2556_v28 = vsel %vm2541_vm3, %v2514_v22, 0.0  ;;  %v2569_v43 = vsel %vm2541_vm3, %v2518_v14, 0.0  ;;  %v2582_v3 = vsel %vm2541_vm3, %v2522_v34, 0.0  ;;  %v4991_v23 = vpop.eup %4990 }
 0x2ad   :  { %v2544_v37 = vadd.f32 %v2543_v62, %v2542_v51  ;;  %v2557_v55 = vadd.f32 %v2556_v28, %v2555_v27  ;;  %v2570_v54 = vadd.f32 %v2569_v43, %v2568_v2  ;;  %v2583_v9 = vadd.f32 %v2582_v3, %v2581_v58  ;;  %v4993_v61 = vpop.eup %4992 }
 0x2ae   :  { %v2571_v56 = vsel %vm2541_vm3, %v2519_v29, 0.0  ;;  %v2584_v5 = vsel %vm2541_vm3, %v2523_v4, 0.0  ;;  %v2512_v51 = vmul.f32 %v6050_v26, %v6162_v42  ;;  %v2516_v27 = vmul.f32 %v6056_v24, %v6162_v42  ;;  %v4995_v4 = vpop.eup %4994 }
 0x2af   :  { %v2546_v57 = vadd.f32 %v2545_v41, %v2544_v37  ;;  %v2559_v8 = vadd.f32 %v2558_v52, %v2557_v55  ;;  %v2572_v16 = vadd.f32 %v2571_v56, %v2570_v54  ;;  %v2585_v49 = vadd.f32 %v2584_v5, %v2583_v9 }
 0x2b0   :  { %v2520_v2 = vmul.f32 %v6106_v25, %v6162_v42  ;;  %v2524_v58 = vmul.f32 %v6089_v50, %v6162_v42  ;;  %v2534_v10 = vmul.f32 %v4987_v17, %v6138_v18  ;;  %v2595_v31 = vsel %vm2541_vm3, %v2526_v38, 0.0 }
 0x2b1   :  { %v2528_v19 = vmul.f32 %v4985_v39, %v6162_v42  ;;  %v2532_v46 = vmul.f32 %v4983_v21, %v6162_v42  ;;  %v2547_v26 = vsel %vm2541_vm3, %v2512_v51, 0.0  ;;  %v2560_v29 = vsel %vm2541_vm3, %v2516_v27, 0.0 }
 0x2b2   :  { %v2573_v24 = vsel %vm2541_vm3, %v2520_v2, 0.0  ;;  %v2586_v25 = vsel %vm2541_vm3, %v2524_v58, 0.0  ;;  %v2548_v47 = vadd.f32 %v2547_v26, %v2546_v57  ;;  %v2561_v50 = vadd.f32 %v2560_v29, %v2559_v8 }
 0x2b3   :  { %v2574_v45 = vadd.f32 %v2573_v24, %v2572_v16  ;;  %v2536_v22 = vmul.f32 %v4991_v23, %v6162_v42  ;;  %v2587_v14 = vadd.f32 %v2586_v25, %v2585_v49  ;;  %v2596_v34 = vadd.f32 %v2595_v31, %v2594_v13 }
 0x2b4   :  { %v2597_v38 = vsel %vm2541_vm3, %v2527_v7, 0.0  ;;  %v2599_v21 = vsel %vm2541_vm3, %v2528_v19, 0.0  ;;  %v2549_v39 = vrot.slane %v2548_v47, 4  ;;  %v2562_v62 = vrot.slane %v2561_v50, 4 }
 0x2b5   :  { %v2575_v28 = vrot.slane %v2574_v45, 4  ;;  %v2608_v43 = vsel %vm2541_vm3, %v2530_v35, 0.0  ;;  %v2588_v3 = vrot.slane %v2587_v14, 4  ;;  %v2598_v17 = vadd.f32 %v2597_v38, %v2596_v34 }
 0x2b6   :  { %v2609_v37 = vadd.f32 %v2608_v43, %v6136_v1  ;;  %v2610_v55 = vsel %vm2541_vm3, %v2531_v11, 0.0  ;;  %v2550_v54 = vadd.f32 %v2549_v39, %v2548_v47  ;;  %v2563_v9 = vadd.f32 %v2562_v62, %v2561_v50 }
 0x2b7   :  { %v2576_v41 = vadd.f32 %v2575_v28, %v2574_v45  ;;  %v2612_v13 = vsel %vm2541_vm3, %v2532_v46, 0.0  ;;  %v2589_v52 = vadd.f32 %v2588_v3, %v2587_v14  ;;  %v2600_v7 = vadd.f32 %v2599_v21, %v2598_v17 }
 0x2b8   :  { %v2611_v56 = vadd.f32 %v2610_v55, %v2609_v37  ;;  %v2620_v5 = vsel %vm2541_vm3, %v6121_v48, 0.0  ;;  %v2551_v57 = vrot.slane %v2550_v54, 2  ;;  %v2564_v8 = vrot.slane %v2563_v9, 2 }
 0x2b9   :  { %v2577_v35 = vrot.slane %v2576_v41, 2  ;;  %v2621_v16 = vsel %vm2541_vm3, %v2534_v10, 0.0  ;;  %v2590_v49 = vrot.slane %v2589_v52, 2  ;;  %v2601_v1 = vrot.slane %v2600_v7, 4 }
 0x2ba   :  { %v2613_v23 = vadd.f32 %v2612_v13, %v2611_v56  ;;  %v2622_v11 = vadd.f32 %v2621_v16, %v2620_v5  ;;  %v2552_v51 = vadd.f32 %v2551_v57, %v2550_v54  ;;  %v2565_v27 = vadd.f32 %v2564_v8, %v2563_v9 }
 0x2bb   :  { %v2578_v2 = vadd.f32 %v2577_v35, %v2576_v41  ;;  %v2623_v58 = vsel %vm2541_vm3, %v6156_v32, 0.0  ;;  %v2538_v31 = vmul.f32 %v4989_v15, %v6138_v18  ;;  %v2602_v19 = vadd.f32 %v2601_v1, %v2600_v7 }
 0x2bc   :  { %v2614_v46 = vrot.slane %v2613_v23, 4  ;;  %v2624_v48 = vadd.f32 %v2623_v58, %v2622_v11  ;;  %v2553_v26 = vrot.slane %v2552_v51, 1  ;;  %v2566_v29 = vrot.slane %v2565_v27, 1 }
 0x2bd   :  { %v2579_v24 = vrot.slane %v2578_v2, 1  ;;  %v2625_v10 = vsel %vm2541_vm3, %v2536_v22, 0.0  ;;  %v2591_v25 = vadd.f32 %v2590_v49, %v2589_v52  ;;  %v2603_v47 = vrot.slane %v2602_v19, 2 }
 0x2be   :  { %v2615_v50 = vadd.f32 %v2614_v46, %v2613_v23  ;;  %v2626_v45 = vadd.f32 %v2625_v10, %v2624_v48  ;;  %v2539_v14 = vmul.f32 %v4995_v4, %v6128_v6  ;;  %v2540_v34 = vmul.f32 %v4993_v61, %v6162_v42 }
 0x2bf   :  { %v6200_v38 = vadd.f32 %v2553_v26, %v2552_v51  ;;  %v6202_v32 = vadd.f32 %v2566_v29, %v2565_v27  ;;  %v6204_v21 = vadd.f32 %v2579_v24, %v2578_v2  ;;  %v2604_v39 = vadd.f32 %v2603_v47, %v2602_v19 }
 0x2c0   :  { %v2616_v18 = vrot.slane %v2615_v50, 2  ;;  %v2627_v15 = vrot.slane %v2626_v45, 4  ;;  %v2633_v22 = vsel %vm2541_vm3, %v6133_v60, 0.0  ;;  %v2634_v62 = vsel %vm2541_vm3, %v2538_v31, 0.0 }
 0x2c1   :  { %v2592_v28 = vrot.slane %v2591_v25, 1  ;;  %v2635_v3 = vadd.f32 %v2634_v62, %v2633_v22  ;;  %v3405_v6 = vsel %vm3404_vm4, %v6202_v32, %v6200_v38  ;;  %v2636_v42 = vsel %vm2541_vm3, %v2539_v14, 0.0 }
 0x2c2   :  { %v2628_v43 = vadd.f32 %v2627_v15, %v2626_v45  ;;  %v2638_v61 = vsel %vm2541_vm3, %v2540_v34, 0.0  ;;  %v2617_v4 = vadd.f32 %v2616_v18, %v2615_v50  ;;  %v2605_v55 = vrot.slane %v2604_v39, 1 }
 0x2c3   :  { %v2637_v37 = vadd.f32 %v2636_v42, %v2635_v3  ;;  %v3407_v60 = vsel %vm3406_vm5, %v6204_v21, %v3405_v6  ;;  %v6216_v54 = vadd.f32 %v2592_v28, %v2591_v25  ;;  %v6238_v31 = vsub.s32 0, %v6020_v59 }
 0x2c4   :  { %v2629_v17 = vrot.slane %v2628_v43, 2  ;;  %v2618_v13 = vrot.slane %v2617_v4, 1  ;;  %v6220_v56 = vadd.f32 %v2605_v55, %v2604_v39  ;;  %v3573_v19 = vsub.s32 1, %v6020_v59 }
 0x2c5   :  { %v2639_v9 = vadd.f32 %v2638_v61, %v2637_v37  ;;  %v3409_v7 = vsel %vm3408_vm6, %v6216_v54, %v3407_v60  ;;  %v3577_v46 = vsub.s32 2, %v6020_v59  ;;  %v3581_v48 = vsub.s32 3, %v6020_v59 }
 0x2c6   :  { %v2630_v41 = vadd.f32 %v2629_v17, %v2628_v43  ;;  %v3411_v8 = vsel %vm3410_vm7, %v6220_v56, %v3409_v7  ;;  %v6224_v35 = vadd.f32 %v2618_v13, %v2617_v4  ;;  %v3585_v25 = vsub.s32 4, %v6020_v59 }
 0x2c7   :  { %v2640_v52 = vrot.slane %v2639_v9, 4  ;;  %v3589_v15 = vsub.s32 5, %v6020_v59  ;;  %v3593_v28 = vsub.s32 6, %v6020_v59  ;;  %v3597_v43 = vsub.s32 7, %v6020_v59 }
 0x2c8   :  { %v2631_v57 = vrot.slane %v2630_v41, 1  ;;  %v3413_v1 = vsel %vm3412_vm8, %v6224_v35, %v3411_v8 }
 0x2c9   :  { %v2641_v5 = vadd.f32 %v2640_v52, %v2639_v9 }
 0x2ca   :  { %v6228_v23 = vadd.f32 %v2631_v57, %v2630_v41 }
 0x2cb   :  { %v2642_v16 = vrot.slane %v2641_v5, 2 }
 0x2cc   :  { %v3415_v51 = vsel %vm3414_vm9, %v6228_v23, %v3413_v1 }
 0x2cd   :  { %v2643_v49 = vadd.f32 %v2642_v16, %v2641_v5 }
 0x2cf   :  { %v2644_v11 = vrot.slane %v2643_v49, 1 }
 0x2d1   :  { %v6232_v27 = vadd.f32 %v2644_v11, %v2643_v49 }
 0x2d3   :  { %v3417_v2 = vsel %vm3416_vm10, %v6232_v27, %v3415_v51 }
 0x2d4   :  { %v3419_v58 = vsel %vm2541_vm3, %v3417_v2, -inf }
 0x2d5   :  { %3420 = vmax.xlane.f32.xlu0 %v3419_v58 }
 0x331   :  { %v3565_v26 = vpop.xlane.xlu1 %3564 }
 0x332   :  { %v3570_v29 = vrot.slane %v3565_v26, %v6238_v31  ;;  %v3574_v24 = vrot.slane %v3565_v26, %v3573_v19  ;;  %v3578_v10 = vrot.slane %v3565_v26, %v3577_v46  ;;  %v3582_v47 = vrot.slane %v3565_v26, %v3581_v48 }
 0x333   :  { %v3586_v39 = vrot.slane %v3565_v26, %v3585_v25  ;;  %v3594_v3 = vrot.slane %v3565_v26, %v3593_v28  ;;  %v3598_v42 = vrot.slane %v3565_v26, %v3597_v43 }
 0x334   :  { %v3607_v50 = vsub.f32 %v6010_v33, %v3570_v29  ;;  %v3608_v45 = vsub.f32 %v6040_v63, %v3574_v24  ;;  %v3609_v14 = vsub.f32 %v6024_v0, %v3578_v10  ;;  %v3610_v22 = vsub.f32 %v6054_v20, %v3582_v47 }
 0x335   :  { %v3590_v33 = vrot.slane %v3565_v26, %v3589_v15  ;;  %v3611_v63 = vsub.f32 %v6064_v53, %v3586_v39  ;;  %v3613_v61 = vsub.f32 %v6102_v44, %v3594_v3  ;;  %v3614_v37 = vsub.f32 %v6110_v30, %v3598_v42 }
 0x336   :  { %v3615_v34 = vmul.f32 1.442695, %v3607_v50  ;;  %v3619_v18 = vmul.f32 1.442695, %v3609_v14  ;;  %v3617_v62 = vmul.f32 1.442695, %v3608_v45 }
 0x337   :  { %v3621_v0 = vmul.f32 1.442695, %v3610_v22  ;;  %v3612_v6 = vsub.f32 %v6082_v12, %v3590_v33  ;;  %v3623_v20 = vmul.f32 1.442695, %v3611_v63  ;;  %v3627_v55 = vmul.f32 1.442695, %v3613_v61 }
 0x338   :  { %4996 = vpow2.f32 %v3615_v34  ;;  %v3629_v44 = vmul.f32 1.442695, %v3614_v37 }
 0x339   :  { %4998 = vpow2.f32 %v3619_v18  ;;  %v3625_v4 = vmul.f32 1.442695, %v3612_v6 }
 0x33a   :  { %5000 = vpow2.f32 %v3617_v62 }
 0x33b   :  { %5002 = vpow2.f32 %v3621_v0 }
 0x33c   :  { %5004 = vpow2.f32 %v3623_v20 }
 0x33d   :  { %5006 = vpow2.f32 %v3625_v4 }
 0x33e   :  { %5008 = vpow2.f32 %v3627_v55 }
 0x33f   :  { %5010 = vpow2.f32 %v3629_v44 }
 0x345   :  { %v6269_v17 = vpop.eup %4996 }
 0x346   :  { %3640 = vperm.xlu1 %4898, %v6269_v17   ;;  %v6272_v53 = vpop.eup %4998 }
 0x347   :  { %3646 = vperm.xlu0 %4899, %v6272_v53   ;;  %v6276_v12 = vpop.eup %5000 }
 0x348   :  { %v6279_v60 = vpop.eup %5002 }
 0x349   :  { %v6282_v9 = vpop.eup %5004 }
 0x34a   :  { %3643 = vperm.xlu1 %4898, %v6276_v12   ;;  %v6285_v30 = vpop.eup %5006 }
 0x34b   :  { %v6288_v41 = vpop.eup %5008 }
 0x34c   :  { %v6291_v13 = vpop.eup %5010 }
 0x34e   :  { %3649 = vperm.xlu1 %4898, %v6279_v60  }
 0x352   :  { %3652 = vperm.xlu1 %4898, %v6282_v9  }
 0x356   :  { %3655 = vperm.xlu1 %4898, %v6285_v30  }
 0x35a   :  { %3658 = vperm.xlu1 %4898, %v6288_v41  }
 0x35e   :  { %3661 = vperm.xlu1 %4898, %v6291_v13   ;;  %v3421_v52 = vpop.xlane.xlu0 %3420 }
 0x35f   :  { %v3423_v7 = vrot.slane %v3421_v52, 1  ;;  %v3424_v5 = vrot.slane %v3421_v52, 2  ;;  %v3425_v57 = vrot.slane %v3421_v52, 3  ;;  %v3426_v8 = vrot.slane %v3421_v52, 4 }
 0x360   :  { %v3427_v16 = vrot.slane %v3421_v52, 5  ;;  %v3428_v49 = vrot.slane %v3421_v52, 6  ;;  %v3429_v1 = vrot.slane %v3421_v52, 7  ;;  %v3438_v11 = vsub.f32 %v6200_v38, %v3421_v52 }
 0x361   :  { %v3439_v51 = vsub.f32 %v6202_v32, %v3423_v7  ;;  %v3440_v2 = vsub.f32 %v6204_v21, %v3424_v5  ;;  %v3441_v58 = vsub.f32 %v6216_v54, %v3425_v57  ;;  %v3442_v26 = vsub.f32 %v6220_v56, %v3426_v8 }
 0x362   :  { %v3443_v29 = vsub.f32 %v6224_v35, %v3427_v16  ;;  %v3444_v24 = vsub.f32 %v6228_v23, %v3428_v49  ;;  %v3446_v10 = vmul.f32 1.442695, %v3438_v11  ;;  %v3445_v14 = vsub.f32 %v6232_v27, %v3429_v1 }
 0x363   :  { %v3448_v47 = vmul.f32 1.442695, %v3439_v51  ;;  %v3450_v50 = vmul.f32 1.442695, %v3440_v2  ;;  %v3452_v45 = vmul.f32 1.442695, %v3441_v58 }
 0x364   :  { %5012 = vpow2.f32 %v3446_v10  ;;  %v3454_v38 = vmul.f32 1.442695, %v3442_v26  ;;  %v3456_v32 = vmul.f32 1.442695, %v3443_v29  ;;  %v3458_v21 = vmul.f32 1.442695, %v3444_v24 }
 0x365   :  { %5014 = vpow2.f32 %v3448_v47  ;;  %v3460_v54 = vmul.f32 1.442695, %v3445_v14 }
 0x366   :  { %5016 = vpow2.f32 %v3450_v50 }
 0x367   :  { %5018 = vpow2.f32 %v3452_v45 }
 0x368   :  { %5020 = vpow2.f32 %v3454_v38 }
 0x369   :  { %5022 = vpow2.f32 %v3456_v32 }
 0x36a   :  { %5024 = vpow2.f32 %v3458_v21 }
 0x36b   :  { %5026 = vpow2.f32 %v3460_v54 }
 0x371   :  { %v5013_v56 = vpop.eup %5012 }
 0x372   :  { %v5015_v35 = vpop.eup %5014 }
 0x373   :  { %v5017_v23 = vpop.eup %5016  ;;  %v3470_v34 = vrot.slane %v5015_v35, 7 }
 0x374   :  { %v5019_v18 = vpop.eup %5018  ;;  %v3472_v39 = vrot.slane %v5017_v23, 6 }
 0x375   :  { %v6302_v22 = vpop.eup %5020  ;;  %v3471_v27 = vsel %vm3404_vm4, %v3470_v34, %v5013_v56  ;;  %v3474_v62 = vrot.slane %v5019_v18, 5 }
 0x376   :  { %v6305_v33 = vpop.eup %5022  ;;  %v3473_v63 = vsel %vm3406_vm5, %v3472_v39, %v3471_v27  ;;  %v3476_v0 = vrot.slane %v6302_v22, 4 }
 0x377   :  { %v6309_v3 = vpop.eup %5024  ;;  %v3475_v6 = vsel %vm3408_vm6, %v3474_v62, %v3473_v63  ;;  %v3478_v20 = vrot.slane %v6305_v33, 3 }
 0x378   :  { %v6313_v42 = vpop.eup %5026  ;;  %v3477_v61 = vsel %vm3410_vm7, %v3476_v0, %v3475_v6  ;;  %v3480_v4 = vrot.slane %v6309_v3, 2 }
 0x379   :  { %v3479_v37 = vsel %vm3412_vm8, %v3478_v20, %v3477_v61  ;;  %v3482_v44 = vrot.slane %v6313_v42, 1  ;;  %v5032_v61 = vld [vmem:[%s6684_s1 + $0x8] sm:$0xff] }
 0x37a   :  { %v3481_v55 = vsel %vm3414_vm9, %v3480_v4, %v3479_v37  ;;  %v5033_v37 = vld [vmem:[%s6684_s1] sm:$0xff] }
 0x37b   :  { %v3483_v52 = vsel %vm3416_vm10, %v3482_v44, %v3481_v55  ;;  %v5034_v44 = vld [vmem:[%s6684_s1 + $0x18] sm:$0xff] }
 0x37c   :  { %v3485_v7 = vsel %vm2541_vm3, %v3483_v52, 0.0 }
 0x382   :  { %3486 = vadd.xlane.f32.xlu1 %v3485_v7 }
 0x3c1   :  { %v3641_v5 = vpop.permute.xlu1 %3640 }
 0x3c2   :  { %v3666_v8 = vrot.slane %v3641_v5, %v6038_v36  ;;  %v3647_v16 = vpop.permute.xlu0 %3646  ;;  %v5035_v5 = vld [vmem:[%s6684_s1 + $0x20] sm:$0xff] }
 0x3c3   :  { %v3674_v11 = vrot.slane %v3647_v16, %v6038_v36 }
 0x3c5   :  { %v3644_v57 = vpop.permute.xlu1 %3643 }
 0x3c6   :  { %v3670_v49 = vrot.slane %v3644_v57, %v6038_v36 }
 0x3c8   :  { %v3695_v1 = vsel %vm3404_vm4, %v3670_v49, %v3666_v8 }
 0x3c9   :  { %v3650_v51 = vpop.permute.xlu1 %3649  ;;  %v3696_v58 = vsel %vm3406_vm5, %v3674_v11, %v3695_v1  ;;  %v5036_v1 = vld [vmem:[%s6684_s1 + $0x50] sm:$0xff] }
 0x3ca   :  { %v3678_v2 = vrot.slane %v3650_v51, %v6038_v36  ;;  %v5037_v51 = vld [vmem:[%s6684_s1 + $0x28] sm:$0xff] }
 0x3cc   :  { %v3697_v26 = vsel %vm3408_vm6, %v3678_v2, %v3696_v58 }
 0x3cd   :  { %v3653_v29 = vpop.permute.xlu1 %3652 }
 0x3ce   :  { %v3682_v24 = vrot.slane %v3653_v29, %v6038_v36 }
 0x3d0   :  { %v3698_v10 = vsel %vm3410_vm7, %v3682_v24, %v3697_v26  ;;  %v5038_v24 = vld [vmem:[%s6684_s1 + $0x60] sm:$0xff] }
 0x3d1   :  { %v3656_v47 = vpop.permute.xlu1 %3655 }
 0x3d2   :  { %v3686_v50 = vrot.slane %v3656_v47, %v6038_v36  ;;  %v5039_v47 = vld [vmem:[%s6684_s1 + $0x10] sm:$0xff] }
 0x3d4   :  { %v3699_v45 = vsel %vm3412_vm8, %v3686_v50, %v3698_v10 }
 0x3d5   :  { %v3659_v14 = vpop.permute.xlu1 %3658 }
 0x3d6   :  { %v3690_v38 = vrot.slane %v3659_v14, %v6038_v36 }
 0x3d8   :  { %v6335_v32 = vsel %vm3414_vm9, %v3690_v38, %v3699_v45 }
 0x3d9   :  { %v6337_v21 = vpop.permute.xlu1 %3661 }
 0x40b   :  { %v3487_v54 = vpop.xlane.xlu1 %3486 }
 0x40c   :  { %5028 = vrcp.f32 %v3487_v54  ;;  %v5040_v54 = vld [vmem:[%s6684_s1 + $0x68] sm:$0xff] }
 0x419   :  { %v6339_v34 = vpop.eup %5028 }
 0x41a   :  { %v3505_v39 = vmul.f32 %v6339_v34, %v5013_v56  ;;  %v3490_v27 = vrot.slane %v6339_v34, 1  ;;  %v3491_v62 = vrot.slane %v6339_v34, 2  ;;  %v3492_v63 = vrot.slane %v6339_v34, 3 }
 0x41b   :  { %v3494_v58 = vrot.slane %v6339_v34, 5 }
 0x41c   :  { %v3759_v0 = vrot.slane %v3505_v39, %v6238_v31  ;;  %v3506_v6 = vmul.f32 %v5015_v35, %v3490_v27  ;;  %v3507_v20 = vmul.f32 %v5017_v23, %v3491_v62  ;;  %v3508_v7 = vmul.f32 %v5019_v18, %v3492_v63  ;;  %v5041_v27 = vld [vmem:[%s6684_s1 + $0x30] sm:$0xff] }
 0x41d   :  { %v3510_v45 = vmul.f32 %v6305_v33, %v3494_v58  ;;  %v3493_v33 = vrot.slane %v6339_v34, 4 }
 0x41e   :  { %v3789_v4 = vmul.f32 %v5032_v61, %v3759_v0  ;;  %v3788_v56 = vmul.f32 %v5033_v37, %v3759_v0  ;;  %v3763_v55 = vrot.slane %v3506_v6, %v6238_v31  ;;  %v3791_v52 = vmul.f32 %v5034_v44, %v3759_v0 }
 0x41f   :  { %v6362_v8 = vrot.slane %v3507_v20, %v6238_v31  ;;  %v6365_v16 = vrot.slane %v3508_v7, %v6238_v31  ;;  %v3790_v50 = vmul.f32 %v5039_v47, %v3759_v0  ;;  %v6397_v63 = vrot.slane %v3510_v45, %v6238_v31  ;;  %v5042_v20 = vld [vmem:[%s6684_s1 + $0x78] sm:$0xff]  ;;  %v5044_v7 = vld [vmem:[%s6684_s1 + $0xa0] sm:$0xff] }
 0x420   :  { %v3823_v35 = vsel %vm2541_vm3, %v3789_v4, 0.0  ;;  %v3820_v23 = vsel %vm2541_vm3, %v3788_v56, 0.0  ;;  %v3792_v57 = vmul.f32 %v5035_v5, %v3763_v55  ;;  %v3829_v49 = vsel %vm2541_vm3, %v3791_v52, 0.0  ;;  %v5043_v4 = vld [vmem:[%s6684_s1 + $0x40] sm:$0xff] }
 0x421   :  { %3824 = vadd.xlane.f32.xlu0 %v3823_v35  ;;  %3821 = vadd.xlane.f32.xlu1 %v3820_v23  ;;  %v3798_v11 = vmul.f32 %v5036_v1, %v6362_v8  ;;  %v3793_v2 = vmul.f32 %v5037_v51, %v3763_v55  ;;  %v3800_v10 = vmul.f32 %v5038_v24, %v6365_v16  ;;  %v3826_v38 = vsel %vm2541_vm3, %v3790_v50, 0.0  ;;  %v5045_v23 = vld [vmem:[%s6684_s1 + $0x48] sm:$0xff]  ;;  %v5047_v1 = vld [vmem:[%s6684_s1 + $0x38] sm:$0xff] }
 0x422   :  { %v3832_v18 = vsel %vm2541_vm3, %v3792_v57, 0.0  ;;  %v3801_v39 = vmul.f32 %v5040_v54, %v6365_v16  ;;  %v3794_v62 = vmul.f32 %v5041_v27, %v3763_v55  ;;  %v3803_v61 = vmul.f32 %v5042_v20, %v6365_v16  ;;  %v5051_v54 = vld [vmem:[%s6684_s1 + $0x70] sm:$0xff]  ;;  %v5053_v20 = vld [vmem:[%s6684_s1 + $0x88] sm:$0xff] }
 0x423   :  { %v3850_v26 = vsel %vm2541_vm3, %v3798_v11, 0.0  ;;  %v3835_v29 = vsel %vm2541_vm3, %v3793_v2, 0.0  ;;  %v3856_v14 = vsel %vm2541_vm3, %v3800_v10, 0.0  ;;  %v3796_v37 = vmul.f32 %v5043_v4, %v6362_v8  ;;  %v5049_v10 = vld [vmem:[%s6684_s1 + $0x58] sm:$0xff]  ;;  %v5054_v4 = vld [vmem:[%s6684_s1 + $0xc0] sm:$0xff] }
 0x424   :  { %v3859_v0 = vsel %vm2541_vm3, %v3801_v39, 0.0  ;;  %v3838_v6 = vsel %vm2541_vm3, %v3794_v62, 0.0  ;;  %v3509_v56 = vmul.f32 %v6302_v22, %v3493_v33  ;;  %v3865_v44 = vsel %vm2541_vm3, %v3803_v61, 0.0  ;;  %v5046_v22 = vld [vmem:[%s6684_s1 + $0xa8] sm:$0xff]  ;;  %v5052_v62 = vld [vmem:[%s6684_s1 + $0x80] sm:$0xff] }
 0x425   :  { %3830 = vadd.xlane.f32.xlu0 %v3829_v49  ;;  %3833 = vadd.xlane.f32.xlu1 %v3832_v18  ;;  %v3844_v52 = vsel %vm2541_vm3, %v3796_v37, 0.0  ;;  %v3808_v35 = vmul.f32 %v5044_v7, %v6397_v63  ;;  %v3797_v5 = vmul.f32 %v5045_v23, %v6362_v8  ;;  %v3809_v57 = vmul.f32 %v5046_v22, %v6397_v63  ;;  %v5056_v7 = vld [vmem:[%s6684_s1 + $0xc8] sm:$0xff] }
 0x426   :  { %v3795_v11 = vmul.f32 %v5047_v1, %v3763_v55  ;;  %v3775_v51 = vrot.slane %v3509_v56, %v6238_v31  ;;  %v3495_v2 = vrot.slane %v6339_v34, 6  ;;  %v3799_v55 = vmul.f32 %v5049_v10, %v6362_v8 }
 0x427   :  { %v3880_v49 = vsel %vm2541_vm3, %v3808_v35, 0.0  ;;  %v3847_v18 = vsel %vm2541_vm3, %v3797_v5, 0.0  ;;  %v3883_v58 = vsel %vm2541_vm3, %v3809_v57, 0.0  ;;  %v3802_v8 = vmul.f32 %v5051_v54, %v6365_v16  ;;  %v5058_v57 = vld [vmem:[%s6684_s1 + $0xd0] sm:$0xff] }
 0x428   :  { %v3511_v47 = vmul.f32 %v6309_v3, %v3495_v2  ;;  %v3853_v45 = vsel %vm2541_vm3, %v3799_v55, 0.0  ;;  %v3694_v39 = vrot.slane %v6337_v21, %v6038_v36  ;;  %v3804_v33 = vmul.f32 %v5052_v62, %v3775_v51  ;;  %v5060_v2 = vld [vmem:[%s6684_s1 + $0xe8] sm:$0xff] }
 0x429   :  { %3851 = vadd.xlane.f32.xlu0 %v3850_v26  ;;  %3836 = vadd.xlane.f32.xlu1 %v3835_v29  ;;  %v3841_v26 = vsel %vm2541_vm3, %v3795_v11, 0.0  ;;  %v5048_v29 = vld [vmem:[%s6684_s1 + $0x98] sm:$0xff]  ;;  %v3862_v27 = vsel %vm2541_vm3, %v3802_v8, 0.0  ;;  %v3496_v36 = vrot.slane %v6339_v34, 7  ;;  %v3805_v61 = vmul.f32 %v5053_v20, %v3775_v51 }
 0x42a   :  { %v3807_v24 = vmul.f32 %v5048_v29, %v3775_v51  ;;  %v3701_v16 = vsel %vm3416_vm10, %v3694_v39, %v6335_v32  ;;  %v3868_v21 = vsel %vm2541_vm3, %v3804_v33, 0.0  ;;  %v4087_v33 = vadd.s32 4294967240, %v6018_v40 }
 0x42b   :  { %v3512_v32 = vmul.f32 %v6313_v42, %v3496_v36  ;;  %v3871_v34 = vsel %vm2541_vm3, %v3805_v61, 0.0  ;;  %v5057_v42 = vld [vmem:[%s6684_s1 + $0xb8] sm:$0xff] }
 0x42c   :  { %v3877_v50 = vsel %vm2541_vm3, %v3807_v24, 0.0  ;;  %v3811_v23 = vmul.f32 %v5057_v42, %v6397_v63  ;;  %v5061_v24 = vld [vmem:[%s6684_s1 + $0xd8] sm:$0xff]  ;;  %v6524_v20 = vsub.s32 %v4087_v33, %v6020_v59 }
 0x42d   :  { %3857 = vadd.xlane.f32.xlu0 %v3856_v14  ;;  %3827 = vadd.xlane.f32.xlu1 %v3826_v38  ;;  %v5050_v14 = vld [vmem:[%s6684_s1 + $0xb0] sm:$0xff] }
 0x42e   :  { %v3810_v38 = vmul.f32 %v5050_v14, %v6397_v63  ;;  %v3889_v1 = vsel %vm2541_vm3, %v3811_v23, 0.0  ;;  %v5059_v63 = vld [vmem:[%s6684_s1 + $0xe0] sm:$0xff] }
 0x430   :  { %v3886_v3 = vsel %vm2541_vm3, %v3810_v38, 0.0 }
 0x431   :  { %3860 = vadd.xlane.f32.xlu0 %v3859_v0  ;;  %3839 = vadd.xlane.f32.xlu1 %v3838_v6  ;;  %v3783_v0 = vrot.slane %v3511_v47, %v6238_v31  ;;  %v3703_v6 = vsel %vm1428_vm2, %v3701_v16, 0.0  ;;  %v4068_v47 = vadd.s32 4294967264, %v6018_v40 }
 0x433   :  { %v3812_v37 = vmul.f32 %v5054_v4, %v3783_v0  ;;  %v3813_v35 = vmul.f32 %v5056_v7, %v3783_v0  ;;  %v3815_v10 = vmul.f32 %v5061_v24, %v3783_v0 }
 0x435   :  { %3866 = vadd.xlane.f32.xlu0 %v3865_v44  ;;  %3845 = vadd.xlane.f32.xlu1 %v3844_v52  ;;  %v3892_v56 = vsel %vm2541_vm3, %v3812_v37, 0.0  ;;  %v5055_v44 = vld [vmem:[%s6684_s1 + $0x90] sm:$0xff]  ;;  %v3895_v22 = vsel %vm2541_vm3, %v3813_v35, 0.0  ;;  %v3901_v55 = vsel %vm2541_vm3, %v3815_v10, 0.0 }
 0x436   :  { %v3806_v52 = vmul.f32 %v5055_v44, %v3775_v51 }
 0x438   :  { %v3874_v5 = vsel %vm2541_vm3, %v3806_v52, 0.0 }
 0x439   :  { %3881 = vadd.xlane.f32.xlu0 %v3880_v49  ;;  %3848 = vadd.xlane.f32.xlu1 %v3847_v18  ;;  %v3814_v49 = vmul.f32 %v5058_v57, %v3783_v0  ;;  %v6490_v18 = vrot.slane %v3512_v32, %v6238_v31  ;;  %v4080_v0 = vadd.s32 4294967248, %v6018_v40 }
 0x43b   :  { %v3898_v11 = vsel %vm2541_vm3, %v3814_v49, 0.0  ;;  %v3816_v51 = vmul.f32 %v5059_v63, %v6490_v18  ;;  %v6528_v4 = vsub.s32 %v4080_v0, %v6020_v59 }
 0x43d   :  { %3884 = vadd.xlane.f32.xlu0 %v3883_v58  ;;  %3842 = vadd.xlane.f32.xlu1 %v3841_v26  ;;  %v3817_v58 = vmul.f32 %v5060_v2, %v6490_v18  ;;  %v3904_v26 = vsel %vm2541_vm3, %v3816_v51, 0.0 }
 0x43f   :  { %v3907_v29 = vsel %vm2541_vm3, %v3817_v58, 0.0 }
 0x441   :  { %3878 = vadd.xlane.f32.xlu0 %v3877_v50  ;;  %3854 = vadd.xlane.f32.xlu1 %v3853_v45  ;;  %v4073_v50 = vadd.s32 4294967256, %v6018_v40  ;;  %v6511_v45 = vsub.s32 %v4068_v47, %v6020_v59 }
 0x443   :  { %v6514_v14 = vsub.s32 %v4073_v50, %v6020_v59 }
 0x445   :  { %3887 = vadd.xlane.f32.xlu0 %v3886_v3  ;;  %3863 = vadd.xlane.f32.xlu1 %v3862_v27 }
 0x449   :  { %3869 = vadd.xlane.f32.xlu1 %v3868_v21  ;;  %3704 = vadd.xlane.f32.xlu0 %v3703_v6 }
 0x44d   :  { %3872 = vadd.xlane.f32.xlu1 %v3871_v34  ;;  %3893 = vadd.xlane.f32.xlu0 %v3892_v56 }
 0x451   :  { %3875 = vadd.xlane.f32.xlu1 %v3874_v5  ;;  %3896 = vadd.xlane.f32.xlu0 %v3895_v22 }
 0x455   :  { %3890 = vadd.xlane.f32.xlu1 %v3889_v1  ;;  %3899 = vadd.xlane.f32.xlu0 %v3898_v11 }
 0x459   :  { %3905 = vadd.xlane.f32.xlu1 %v3904_v26  ;;  %3908 = vadd.xlane.f32.xlu0 %v3907_v29 }
 0x45d   :  { %3902 = vadd.xlane.f32.xlu1 %v3901_v55 }
 0x4aa   :  { %v3822_v38 = vpop.xlane.xlu1 %3821  ;;  %v3825_v54 = vpop.xlane.xlu0 %3824 }
 0x4ab   :  { %v4072_v8 = vrot.slane %v3822_v38, %v6511_v45  ;;  %v4077_v39 = vrot.slane %v3825_v54, %v6514_v14 }
 0x4ad   :  { %v4079_v3 = vsel %vm4078_vm11, %v4077_v39, %v4072_v8 }
 0x4ae   :  { %v3834_v27 = vpop.xlane.xlu1 %3833  ;;  %v3831_v62 = vpop.xlane.xlu0 %3830 }
 0x4af   :  { %v4097_v21 = vrot.slane %v3834_v27, %v6511_v45  ;;  %v4091_v34 = vrot.slane %v3831_v62, %v6524_v20 }
 0x4b2   :  { %v3837_v16 = vpop.xlane.xlu1 %3836  ;;  %v3852_v36 = vpop.xlane.xlu0 %3851 }
 0x4b3   :  { %v4101_v6 = vrot.slane %v3837_v16, %v6514_v14  ;;  %v4125_v2 = vrot.slane %v3852_v36, %v6528_v4 }
 0x4b5   :  { %v4102_v61 = vsel %vm4078_vm11, %v4101_v6, %v4097_v21 }
 0x4b6   :  { %v3828_v37 = vpop.xlane.xlu1 %3827  ;;  %v3858_v32 = vpop.xlane.xlu0 %3857 }
 0x4b7   :  { %v4084_v40 = vrot.slane %v3828_v37, %v6528_v4  ;;  %v4135_v35 = vrot.slane %v3858_v32, %v6511_v45 }
 0x4b9   :  { %v4086_v56 = vsel %vm4085_vm12, %v4084_v40, %v4079_v3 }
 0x4ba   :  { %v4093_v44 = vsel %vm4092_vm13, %v4091_v34, %v4086_v56  ;;  %v3840_v52 = vpop.xlane.xlu1 %3839  ;;  %v3861_v7 = vpop.xlane.xlu0 %3860 }
 0x4bb   :  { %v4106_v42 = vrot.slane %v3840_v52, %v6528_v4  ;;  %v4139_v23 = vrot.slane %v3861_v7, %v6514_v14 }
 0x4bd   :  { %v4107_v5 = vsel %vm4085_vm12, %v4106_v42, %v4102_v61  ;;  %v4140_v22 = vsel %vm4078_vm11, %v4139_v23, %v4135_v35 }
 0x4be   :  { %v3846_v57 = vpop.xlane.xlu1 %3845  ;;  %v3867_v49 = vpop.xlane.xlu0 %3866 }
 0x4bf   :  { %v4116_v63 = vrot.slane %v3846_v57, %v6511_v45  ;;  %v4149_v21 = vrot.slane %v3867_v49, %v6524_v20 }
 0x4c2   :  { %v3849_v1 = vpop.xlane.xlu1 %3848  ;;  %v3882_v11 = vpop.xlane.xlu0 %3881 }
 0x4c3   :  { %v4120_v51 = vrot.slane %v3849_v1, %v6514_v14  ;;  %v4173_v10 = vrot.slane %v3882_v11, %v6511_v45 }
 0x4c5   :  { %v4121_v58 = vsel %vm4078_vm11, %v4120_v51, %v4116_v63 }
 0x4c6   :  { %v3843_v26 = vpop.xlane.xlu1 %3842  ;;  %v3885_v29 = vpop.xlane.xlu0 %3884  ;;  %v4126_v24 = vsel %vm4085_vm12, %v4125_v2, %v4121_v58 }
 0x4c7   :  { %v4111_v55 = vrot.slane %v3843_v26, %v6524_v20  ;;  %v4177_v47 = vrot.slane %v3885_v29, %v6514_v14 }
 0x4c9   :  { %v4112_v50 = vsel %vm4092_vm13, %v4111_v55, %v4107_v5  ;;  %v4178_v38 = vsel %vm4078_vm11, %v4177_v47, %v4173_v10 }
 0x4ca   :  { %v4227_v54 = vsel %vm3404_vm4, %v4112_v50, %v4093_v44  ;;  %v3855_v8 = vpop.xlane.xlu1 %3854  ;;  %v3879_v39 = vpop.xlane.xlu0 %3878 }
 0x4cb   :  { %v4130_v3 = vrot.slane %v3855_v8, %v6524_v20  ;;  %v4168_v42 = vrot.slane %v3879_v39, %v6524_v20 }
 0x4cd   :  { %v4131_v27 = vsel %vm4092_vm13, %v4130_v3, %v4126_v24 }
 0x4ce   :  { %v4228_v62 = vsel %vm3406_vm5, %v4131_v27, %v4227_v54  ;;  %v3864_v33 = vpop.xlane.xlu1 %3863  ;;  %v3888_v0 = vpop.xlane.xlu0 %3887 }
 0x4cf   :  { %v4144_v16 = vrot.slane %v3864_v33, %v6528_v4  ;;  %v4182_v36 = vrot.slane %v3888_v0, %v6528_v4  ;;  %v28_v33 = vld [vmem:[%s6690_s0 + $0x10] sm:$0xff]  ;;  %v29_v0 = vld [vmem:[%s6690_s0 + $0x18] sm:$0xff] }
 0x4d1   :  { %v4145_v6 = vsel %vm4085_vm12, %v4144_v16, %v4140_v22  ;;  %v4183_v61 = vsel %vm4085_vm12, %v4182_v36, %v4178_v38 }
 0x4d2   :  { %v4150_v37 = vsel %vm4092_vm13, %v4149_v21, %v4145_v6  ;;  %v3870_v32 = vpop.xlane.xlu1 %3869  ;;  %v3705_v40 = vpop.xlane.xlu0 %3704 }
 0x4d3   :  { %v4229_v34 = vsel %vm3408_vm6, %v4150_v37, %v4228_v62  ;;  %5030 = vrcp.f32 %v3705_v40  ;;  %v4154_v52 = vrot.slane %v3870_v32, %v6511_v45  ;;  %v27_v62 = vld [vmem:[%s6690_s0 + $0x8] sm:$0xff] }
 0x4d4   :  { %v31_v32 = vld [vmem:[%s6690_s0 + $0x28] sm:$0xff] }
 0x4d6   :  { %v3873_v56 = vpop.xlane.xlu1 %3872 }
 0x4d7   :  { %v4158_v44 = vrot.slane %v3873_v56, %v6514_v14  ;;  %v30_v56 = vld [vmem:[%s6690_s0 + $0x20] sm:$0xff] }
 0x4d9   :  { %v4159_v23 = vsel %vm4078_vm11, %v4158_v44, %v4154_v52 }
 0x4da   :  { %v3876_v7 = vpop.xlane.xlu1 %3875 }
 0x4db   :  { %v4163_v35 = vrot.slane %v3876_v7, %v6528_v4 }
 0x4dd   :  { %v4164_v5 = vsel %vm4085_vm12, %v4163_v35, %v4159_v23 }
 0x4de   :  { %v4169_v22 = vsel %vm4092_vm13, %v4168_v42, %v4164_v5  ;;  %v3891_v57 = vpop.xlane.xlu1 %3890 }
 0x4df   :  { %v4187_v49 = vrot.slane %v3891_v57, %v6524_v20  ;;  %v4230_v1 = vsel %vm3410_vm7, %v4169_v22, %v4229_v34  ;;  %v33_v22 = vld [vmem:[%s6690_s0 + $0x38] sm:$0xff] }
 0x4e0   :  { %v5031_v11 = vpop.eup %5030 }
 0x4e1   :  { %v4188_v63 = vsel %vm4092_vm13, %v4187_v49, %v4183_v61  ;;  %v3715_v51 = vrot.slane %v5031_v11, %v3573_v19  ;;  %v3711_v2 = vrot.slane %v5031_v11, %v6238_v31  ;;  %v3727_v24 = vrot.slane %v5031_v11, %v3585_v25 }
 0x4e2   :  { %v6574_v58 = vsel %vm3412_vm8, %v4188_v63, %v4230_v1  ;;  %v3719_v10 = vrot.slane %v5031_v11, %v3577_v46  ;;  %v3735_v31 = vrot.slane %v5031_v11, %v3593_v28  ;;  %v3731_v46 = vrot.slane %v5031_v11, %v3589_v15  ;;  %v5063_v15 = vld [vmem:[%s6684_s1 + $0xf8] sm:$0xff]  ;;  %v32_v1 = vld [vmem:[%s6690_s0 + $0x30] sm:$0xff] }
 0x4e3   :  { %v3749_v26 = vmul.f32 %v6276_v12, %v3715_v51  ;;  %v3748_v29 = vmul.f32 %v6269_v17, %v3711_v2  ;;  %v3752_v55 = vmul.f32 %v6282_v9, %v3727_v24  ;;  %v3723_v12 = vrot.slane %v5031_v11, %v3581_v48  ;;  %v5062_v48 = vld [vmem:[%s6684_s1 + $0xf0] sm:$0xff] }
 0x4e4   :  { %v3750_v19 = vmul.f32 %v6272_v53, %v3719_v10  ;;  %v3754_v17 = vmul.f32 %v6288_v41, %v3735_v31  ;;  %v3753_v9 = vmul.f32 %v6285_v30, %v3731_v46  ;;  %v3739_v53 = vrot.slane %v5031_v11, %v3597_v43  ;;  %v6606_v30 = vpop.xlane.xlu1 %3905 }
 0x4e5   :  { %3923 = vperm.xlu0 %4899, %v3749_v26   ;;  %3918 = vperm.xlu1 %4898, %v3748_v29   ;;  %v3751_v25 = vmul.f32 %v6279_v60, %v3723_v12  ;;  %v3818_v60 = vmul.f32 %v5062_v48, %v6490_v18  ;;  %v3819_v59 = vmul.f32 %v5063_v15, %v6490_v18  ;;  %v26_v18 = vld [vmem:[%s6690_s0] sm:$0xff] }
 0x4e6   :  { %v3755_v28 = vmul.f32 %v6291_v13, %v3739_v53  ;;  %v6608_v13 = vpop.xlane.xlu0 %3893 }
 0x4e7   :  { %v3910_v41 = vsel %vm2541_vm3, %v3818_v60, 0.0  ;;  %v3913_v43 = vsel %vm2541_vm3, %v3819_v59, 0.0 }
 0x4e8   :  { %v6610_v47 = vpop.xlane.xlu1 %3902 }
 0x4e9   :  { %3938 = vperm.xlu0 %4899, %v3752_v55   ;;  %3928 = vperm.xlu1 %4898, %v3750_v19  }
 0x4ea   :  { %v6612_v50 = vpop.xlane.xlu0 %3896 }
 0x4ed   :  { %3948 = vperm.xlu0 %4899, %v3754_v17   ;;  %3933 = vperm.xlu1 %4898, %v3751_v25  }
 0x4ee   :  { %v6614_v54 = vpop.xlane.xlu0 %3899 }
 0x4f1   :  { %3943 = vperm.xlu1 %4898, %v3753_v9  }
 0x4f2   :  { %v6616_v39 = vpop.xlane.xlu0 %3908 }
 0x4f5   :  { %3953 = vperm.xlu1 %4898, %v3755_v28  }
 0x50c   :  { %3911 = vadd.xlane.f32.xlu0 %v3910_v41 }
 0x519   :  { %3914 = vadd.xlane.f32.xlu1 %v3913_v43 }
 0x560   :  { %v3919_v38 = vpop.permute.xlu1 %3918  ;;  %v3924_v27 = vpop.permute.xlu0 %3923 }
 0x561   :  { %v3956_v16 = vmul.f32 %v3919_v38, %v26_v18  ;;  %v3957_v36 = vmul.f32 %v3924_v27, %v27_v62 }
 0x563   :  { %v3964_v40 = vsel %vm87_vm0, %v3956_v16, 0.0  ;;  %v3971_v34 = vsel %vm87_vm0, %v3957_v36, 0.0 }
 0x564   :  { %v3929_v8 = vpop.permute.xlu1 %3928  ;;  %v3939_v61 = vpop.permute.xlu0 %3938  ;;  %v3965_v35 = vrot.slane %v3964_v40, 4  ;;  %v3972_v42 = vrot.slane %v3971_v34, 4 }
 0x565   :  { %v3958_v21 = vmul.f32 %v3929_v8, %v28_v33  ;;  %v3960_v23 = vmul.f32 %v3939_v61, %v30_v56 }
 0x566   :  { %v3966_v2 = vadd.f32 %v3965_v35, %v3964_v40  ;;  %v3973_v26 = vadd.f32 %v3972_v42, %v3971_v34  ;;  %v4196_v35 = vrot.slane %v6612_v50, %v6514_v14  ;;  %v4211_v50 = vrot.slane %v6606_v30, %v6511_v45 }
 0x567   :  { %v3978_v44 = vsel %vm87_vm0, %v3958_v21, 0.0  ;;  %v3992_v29 = vsel %vm87_vm0, %v3960_v23, 0.0  ;;  %v4192_v23 = vrot.slane %v6608_v13, %v6511_v45 }
 0x568   :  { %v3934_v3 = vpop.permute.xlu1 %3933  ;;  %v3979_v57 = vrot.slane %v3978_v44, 4  ;;  %v3949_v49 = vpop.permute.xlu0 %3948  ;;  %v3993_v31 = vrot.slane %v3992_v29, 4  ;;  %v3967_v17 = vrot.slane %v3966_v2, 2  ;;  %v3974_v25 = vrot.slane %v3973_v26, 2 }
 0x569   :  { %v3959_v37 = vmul.f32 %v3934_v3, %v29_v0  ;;  %v3962_v24 = vmul.f32 %v3949_v49, %v32_v1  ;;  %v4206_v49 = vrot.slane %v6610_v47, %v6524_v20 }
 0x56a   :  { %v3980_v10 = vadd.f32 %v3979_v57, %v3978_v44  ;;  %v3994_v60 = vadd.f32 %v3993_v31, %v3992_v29  ;;  %v3968_v15 = vadd.f32 %v3967_v17, %v3966_v2  ;;  %v3975_v59 = vadd.f32 %v3974_v25, %v3973_v26 }
 0x56b   :  { %v3985_v52 = vsel %vm87_vm0, %v3959_v37, 0.0  ;;  %v4006_v46 = vsel %vm87_vm0, %v3962_v24, 0.0 }
 0x56c   :  { %v3944_v6 = vpop.permute.xlu1 %3943  ;;  %v3986_v11 = vrot.slane %v3985_v52, 4  ;;  %v3981_v9 = vrot.slane %v3980_v10, 2  ;;  %v4007_v41 = vrot.slane %v4006_v46, 4  ;;  %v3995_v27 = vrot.slane %v3994_v60, 2 }
 0x56d   :  { %v3961_v7 = vmul.f32 %v3944_v6, %v31_v32  ;;  %v3969_v62 = vrot.slane %v3968_v15, 1  ;;  %v3976_v33 = vrot.slane %v3975_v59, 1 }
 0x56e   :  { %v3987_v55 = vadd.f32 %v3986_v11, %v3985_v52  ;;  %v3982_v43 = vadd.f32 %v3981_v9, %v3980_v10  ;;  %v4008_v18 = vadd.f32 %v4007_v41, %v4006_v46  ;;  %v3996_v6 = vadd.f32 %v3995_v27, %v3994_v60 }
 0x56f   :  { %v3999_v63 = vsel %vm87_vm0, %v3961_v7, 0.0  ;;  %v3970_v37 = vadd.f32 %v3969_v62, %v3968_v15  ;;  %v3977_v32 = vadd.f32 %v3976_v33, %v3975_v59 }
 0x570   :  { %v3954_v5 = vpop.permute.xlu1 %3953  ;;  %v4000_v19 = vrot.slane %v3999_v63, 4  ;;  %v3988_v53 = vrot.slane %v3987_v55, 2  ;;  %v3983_v0 = vrot.slane %v3982_v43, 1  ;;  %v4009_v61 = vrot.slane %v4008_v18, 2 }
 0x571   :  { %v3963_v51 = vmul.f32 %v3954_v5, %v33_v22  ;;  %v3997_v52 = vrot.slane %v3996_v6, 1  ;;  %v4028_v42 = vsel %vm3404_vm4, %v3977_v32, %v3970_v37  ;;  %v4201_v5 = vrot.slane %v6614_v54, %v6528_v4 }
 0x572   :  { %v4001_v28 = vadd.f32 %v4000_v19, %v3999_v63  ;;  %v3989_v38 = vadd.f32 %v3988_v53, %v3987_v55  ;;  %v3984_v40 = vadd.f32 %v3983_v0, %v3982_v43  ;;  %v4010_v7 = vadd.f32 %v4009_v61, %v4008_v18 }
 0x573   :  { %v4013_v12 = vsel %vm87_vm0, %v3963_v51, 0.0  ;;  %v4215_v51 = vrot.slane %v6616_v39, %v6514_v14  ;;  %v3998_v13 = vadd.f32 %v3997_v52, %v3996_v6  ;;  %v4197_v54 = vsel %vm4078_vm11, %v4196_v35, %v4192_v23 }
 0x574   :  { %v4014_v48 = vrot.slane %v4013_v12, 4  ;;  %v4002_v8 = vrot.slane %v4001_v28, 2  ;;  %v3990_v16 = vrot.slane %v3989_v38, 1  ;;  %v4029_v22 = vsel %vm3406_vm5, %v3984_v40, %v4028_v42 }
 0x575   :  { %v4011_v2 = vrot.slane %v4010_v7, 1  ;;  %v4202_v29 = vsel %vm4085_vm12, %v4201_v5, %v4197_v54  ;;  %v4216_v45 = vsel %vm4078_vm11, %v4215_v51, %v4211_v50 }
 0x576   :  { %v4015_v3 = vadd.f32 %v4014_v48, %v4013_v12  ;;  %v4003_v36 = vadd.f32 %v4002_v8, %v4001_v28  ;;  %v3991_v34 = vadd.f32 %v3990_v16, %v3989_v38  ;;  %v4207_v24 = vsel %vm4092_vm13, %v4206_v49, %v4202_v29 }
 0x577   :  { %v4012_v30 = vadd.f32 %v4011_v2, %v4010_v7 }
 0x578   :  { %v4016_v21 = vrot.slane %v4015_v3, 2  ;;  %v4004_v56 = vrot.slane %v4003_v36, 1  ;;  %v4030_v1 = vsel %vm3408_vm6, %v3991_v34, %v4029_v22 }
 0x579   :  { %v4031_v47 = vsel %vm3410_vm7, %v3998_v13, %v4030_v1 }
 0x57a   :  { %v4017_v44 = vadd.f32 %v4016_v21, %v4015_v3  ;;  %v4005_v11 = vadd.f32 %v4004_v56, %v4003_v36 }
 0x57c   :  { %v4018_v63 = vrot.slane %v4017_v44, 1  ;;  %v4032_v10 = vsel %vm3412_vm8, %v4005_v11, %v4031_v47 }
 0x57d   :  { %v4033_v31 = vsel %vm3414_vm9, %v4012_v30, %v4032_v10 }
 0x57e   :  { %v4019_v55 = vadd.f32 %v4018_v63, %v4017_v44 }
 0x580   :  { %v4034_v17 = vsel %vm3416_vm10, %v4019_v55, %v4033_v31 }
 0x595   :  { %v3912_v57 = vpop.xlane.xlu0 %3911 }
 0x596   :  { %v4220_v26 = vrot.slane %v3912_v57, %v6528_v4  ;;  %v4232_v4 = vsel %vm3414_vm9, %v4207_v24, %v6574_v58 }
 0x598   :  { %v4221_v39 = vsel %vm4085_vm12, %v4220_v26, %v4216_v45 }
 0x5a2   :  { %v3915_v19 = vpop.xlane.xlu1 %3914 }
 0x5a3   :  { %v4225_v14 = vrot.slane %v3915_v19, %v6524_v20 }
 0x5a5   :  { %v4226_v12 = vsel %vm4092_vm13, %v4225_v14, %v4221_v39 }
 0x5a6   :  { %v4233_v25 = vsel %vm3416_vm10, %v4226_v12, %v4232_v4 }
 0x5a7   :  { %v4235_v46 = vsel %vm87_vm0, %v4034_v17, %v4233_v25 }
 0x5a8   :  { %4237 = vst.msk [vmem:[%s6691_s7] sm:$0xff] %vm4236_vm14, %v4235_v46 }

</bundles_post_ra>
